<compile_context>
chip_gen: v7x
topology: tpu7x:2x2x1
jax: 0.10.0
libtpu: 0.0.40
codegen_flags: <defaults>
</compile_context>

<pallas_src>
import jax
import jax.numpy as jnp
from jax.experimental import pallas as pl
from jax.experimental.pallas import tpu as pltpu


# --------------------------- fused forward kernel ----------------------------
def _make_fused_kernel(num_layers, T, B, H):
    """Stacked LSTM over T steps -> BN(eval) -> Dropout(id) -> Linear(H, 1)."""
    G = 4 * H  # packed gate width [i|f|g|o]; H=32 -> G=128 = one full lane dim

    def kernel(*refs):
        # refs layout:
        #   x_ref                      (T*B, I)   time-major rows, row = t*B + b
        #   wih0 (I, G), whh0 (H, G), b0 (1, G)               layer 0
        #   per layer l>=1: wcat (2H, G), b (1, G)
        #   bn_gamma, bn_beta, bn_mean, bn_var                (1, H) each
        #   fc_w (1, H), fc_b (1, 1)
        #   out_ref                    (B, 1)
        #   xproj_ref                  (T*B, G)   VMEM scratch
        x_ref, wih0_ref, whh0_ref, b0_ref = refs[0:4]
        upper_refs = refs[4:4 + 2 * (num_layers - 1)]
        hs = 4 + 2 * (num_layers - 1)
        (bn_g_ref, bn_b_ref, bn_m_ref, bn_v_ref,
         fcw_ref, fcb_ref) = refs[hs:hs + 6]
        out_ref = refs[hs + 6]
        xproj_ref = refs[hs + 7]

        # ---- Hoist: layer-0 input projection for ALL timesteps (one lane-dense
        # MXU dot, off the serial recurrence); bias folded in. ----
        xproj_ref[...] = (
            jnp.dot(x_ref[...], wih0_ref[...], preferred_element_type=jnp.float32)
            + b0_ref[...])

        # ---- Hoist weight loads, bias broadcasts, g-gate lane mask. ----
        whh0 = whh0_ref[...]                                       # (H, G)
        upper = []
        for l in range(num_layers - 1):
            w_ref, b_ref = upper_refs[2 * l], upper_refs[2 * l + 1]
            upper.append((w_ref[...],                              # (2H, G)
                          jnp.broadcast_to(b_ref[...], (B, G))))   # (B, G)

        lane = jax.lax.broadcasted_iota(jnp.int32, (B, G), 1)
        g_mask = (lane >= 2 * H) & (lane < 3 * H)                  # g-gate lanes

        def lstm_activate(z, c):
            # z: (B, G) packed pre-activations [i|f|g|o]; c: (B, H)
            s = jax.nn.sigmoid(z)                                  # 1 EUP push
            th = jnp.tanh(z)                                       # 1 EUP push
            act = jnp.where(g_mask, th, s)
            i_g = act[:, 0:H]
            f_g = act[:, H:2 * H]
            g_g = act[:, 2 * H:3 * H]
            o_g = act[:, 3 * H:4 * H]
            c_new = f_g * c + i_g * g_g
            h_new = o_g * jnp.tanh(c_new)
            return h_new, c_new

        zeros = jnp.zeros((B, H), jnp.float32)
        carry0 = tuple((zeros, zeros) for _ in range(num_layers))

        def step(t, carry):
            new_carry = []
            # Layer 0: precomputed input projection + one recurrent dot.
            h, c = carry[0]
            row = pl.multiple_of(t * B, 8)
            z = (xproj_ref[pl.ds(row, B), :]
                 + jnp.dot(h, whh0, preferred_element_type=jnp.float32))
            h, c = lstm_activate(z, c)
            new_carry.append((h, c))
            inp = h
            # Layers >= 1: single fused [inp | h] @ [Wih; Whh] dot per cell.
            for l in range(1, num_layers):
                hl, cl = carry[l]
                w_cat, b_b = upper[l - 1]
                xh = jnp.concatenate([inp, hl], axis=-1)           # (B, 2H)
                z = jnp.dot(xh, w_cat, preferred_element_type=jnp.float32) + b_b
                hl, cl = lstm_activate(z, cl)
                new_carry.append((hl, cl))
                inp = hl
            return tuple(new_carry)

        final = jax.lax.fori_loop(0, T, step, carry0, unroll=min(T, 8))
        h_last = final[num_layers - 1][0]                          # == out[:, -1, :]

        # BatchNorm1d (eval: running stats), Dropout = identity, Linear(H, 1).
        inv_std = jax.lax.rsqrt(bn_v_ref[...] + 1e-5)
        y = (h_last - bn_m_ref[...]) * inv_std * bn_g_ref[...] + bn_b_ref[...]
        # Linear as VPU multiply + lane reduction (avoid N=1 MXU matmul).
        out = jnp.sum(y * fcw_ref[...], axis=-1, keepdims=True) + fcb_ref[...]
        out_ref[...] = out.astype(out_ref.dtype)

    return kernel


def _fused_forward(seq2d, flat_inputs, num_layers, T, B, H):
    """seq2d: (T*B, I) time-major rows, batch already sublane-padded."""
    kernel = _make_fused_kernel(num_layers, T, B, H)

    def full(shape):
        return pl.BlockSpec(shape, lambda i: (0,) * len(shape))

    in_arrays = [seq2d] + list(flat_inputs)
    return pl.pallas_call(
        kernel,
        out_shape=jax.ShapeDtypeStruct((B, 1), jnp.float32),
        grid_spec=pltpu.PrefetchScalarGridSpec(
            num_scalar_prefetch=0,
            grid=(1,),                                  # single fused grid step
            in_specs=[full(a.shape) for a in in_arrays],
            out_specs=full((B, 1)),
            scratch_shapes=[pltpu.VMEM((T * B, 4 * H), jnp.float32)],
        ),
        compiler_params=pltpu.CompilerParams(
            dimension_semantics=("arbitrary",),
            vmem_limit_bytes=32 * 1024 * 1024,
        ),
    )(*in_arrays)


# ------------------------------- Full forward --------------------------------
@jax.jit
def stock_lstm_forward(x, params):
    """x: (B, T, input_size), batch_first like the PyTorch module."""
    B, T, _ = x.shape
    H = params["bn_gamma"].shape[-1]
    num_layers = len(params["lstm"])

    # Time-major, pad batch to a full 8-sublane f32 tile, flatten to rows so the
    # kernel's layer-0 projection is one dot with no in-kernel reshapes.
    B_pad = ((B + 7) // 8) * 8
    seq = jnp.transpose(x, (1, 0, 2)).astype(jnp.float32)          # (T, B, I)
    if B_pad != B:
        seq = jnp.pad(seq, ((0, 0), (0, B_pad - B), (0, 0)))
    seq2d = seq.reshape(T * B_pad, -1)                             # row = t*B_pad + b

    l0 = params["lstm"][0]
    flat = [l0["wih"], l0["whh"], l0["b"]]
    for layer in params["lstm"][1:]:
        flat += [layer["wcat"], layer["b"]]
    flat += [params["bn_gamma"], params["bn_beta"],
             params["bn_mean"], params["bn_var"],
             params["fc_w"], params["fc_b"]]

    out = _fused_forward(seq2d, flat, num_layers, T, B_pad, H)
    return out[:B]


# ----------------------------- Parameter builder ------------------------------
def init_params(key, input_size, hidden_size, num_layers):
    """Builds weights in PyTorch's layout/init, repacked for the kernel:
       layer 0:   wih = w_ih.T (in, 4H), whh = w_hh.T (H, 4H), b = b_ih+b_hh (1, 4H)
       layer >=1: wcat = [w_ih.T ; w_hh.T] (2H, 4H),          b = b_ih+b_hh (1, 4H)
       Gate column order is PyTorch's [i | f | g | o]."""
    H = hidden_size
    k = 1.0 / jnp.sqrt(jnp.float32(H))
    params = {"lstm": []}
    for layer in range(num_layers):
        in_dim = input_size if layer == 0 else H
        key, k1, k2, k3, k4 = jax.random.split(key, 5)
        w_ih = jax.random.uniform(k1, (4 * H, in_dim), jnp.float32, -k, k)
        w_hh = jax.random.uniform(k2, (4 * H, H), jnp.float32, -k, k)
        b_ih = jax.random.uniform(k3, (4 * H,), jnp.float32, -k, k)
        b_hh = jax.random.uniform(k4, (4 * H,), jnp.float32, -k, k)
        b = (b_ih + b_hh).reshape(1, 4 * H)
        if layer == 0:
            params["lstm"].append({"wih": jnp.transpose(w_ih),     # (in, 4H)
                                   "whh": jnp.transpose(w_hh),     # (H, 4H)
                                   "b": b})
        else:
            wcat = jnp.concatenate([jnp.transpose(w_ih),
                                    jnp.transpose(w_hh)], axis=0)  # (2H, 4H)
            params["lstm"].append({"wcat": wcat, "b": b})

    # BatchNorm1d defaults: gamma=1, beta=0, running_mean=0, running_var=1
    params["bn_gamma"] = jnp.ones((1, H), jnp.float32)
    params["bn_beta"] = jnp.zeros((1, H), jnp.float32)
    params["bn_mean"] = jnp.zeros((1, H), jnp.float32)
    params["bn_var"] = jnp.ones((1, H), jnp.float32)

    # Linear(hidden_size, 1)
    key, k5, k6 = jax.random.split(key, 3)
    params["fc_w"] = jax.random.uniform(k5, (1, H), jnp.float32, -k, k)
    params["fc_b"] = jax.random.uniform(k6, (1,), jnp.float32, -k, k).reshape(1, 1)
    return params


# ------------------------- Pure-JAX reference (checks) ------------------------
def ref_forward(x, params):
    B, T, _ = x.shape
    H = params["bn_gamma"].shape[-1]
    L = len(params["lstm"])
    h = [jnp.zeros((B, H), jnp.float32) for _ in range(L)]
    c = [jnp.zeros((B, H), jnp.float32) for _ in range(L)]
    for t in range(T):
        inp = x[:, t, :]
        for l in range(L):
            lp = params["lstm"][l]
            if l == 0:
                z = inp @ lp["wih"] + h[l] @ lp["whh"] + lp["b"]
            else:
                z = jnp.concatenate([inp, h[l]], axis=-1) @ lp["wcat"] + lp["b"]
            i_g = jax.nn.sigmoid(z[:, 0:H])
            f_g = jax.nn.sigmoid(z[:, H:2 * H])
            g_g = jnp.tanh(z[:, 2 * H:3 * H])
            o_g = jax.nn.sigmoid(z[:, 3 * H:4 * H])
            c[l] = f_g * c[l] + i_g * g_g
            h[l] = o_g * jnp.tanh(c[l])
            inp = h[l]
    y = h[-1]
    y = ((y - params["bn_mean"]) * jax.lax.rsqrt(params["bn_var"] + 1e-5)
         * params["bn_gamma"] + params["bn_beta"])
    return y @ params["fc_w"].T + params["fc_b"]


if __name__ == "__main__":
    INPUT_SIZE = 4
    HIDDEN_SIZE = 32
    NUM_LAYERS = 2
    BATCH = 2
    SEQ = 8

    root = jax.random.PRNGKey(0)
    kx, kp = jax.random.split(root)
    x = jax.random.normal(kx, (BATCH, SEQ, INPUT_SIZE), jnp.float32)
    params = init_params(kp, INPUT_SIZE, HIDDEN_SIZE, NUM_LAYERS)

    out = jax.block_until_ready(stock_lstm_forward(x, params))
    assert out.shape == (BATCH, 1), out.shape
    assert bool(jnp.all(jnp.isfinite(out)))

    ref = ref_forward(x, params)
    assert bool(jnp.allclose(out, ref, rtol=1e-4, atol=1e-4)), (out, ref)
    print("KERNEL_OK")
</pallas_src>

<mosaic_0001>
module attributes {stable_mosaic.version = 11 : i64} {
  func.func @kernel(%arg0: i32, %arg1: memref<64x4xf32, #tpu.memory_space<vmem>>, %arg2: memref<4x128xf32, #tpu.memory_space<vmem>>, %arg3: memref<32x128xf32, #tpu.memory_space<vmem>>, %arg4: memref<1x128xf32, #tpu.memory_space<vmem>>, %arg5: memref<64x128xf32, #tpu.memory_space<vmem>>, %arg6: memref<1x128xf32, #tpu.memory_space<vmem>>, %arg7: memref<1x32xf32, #tpu.memory_space<vmem>>, %arg8: memref<1x32xf32, #tpu.memory_space<vmem>>, %arg9: memref<1x32xf32, #tpu.memory_space<vmem>>, %arg10: memref<1x32xf32, #tpu.memory_space<vmem>>, %arg11: memref<1x32xf32, #tpu.memory_space<vmem>>, %arg12: memref<1x1xf32, #tpu.memory_space<vmem>>, %arg13: memref<8x1xf32, #tpu.memory_space<vmem>>, %arg14: memref<64x128xf32, #tpu.memory_space<vmem>>) attributes {dimension_semantics = [#tpu.dimension_semantics<arbitrary>], iteration_bounds = array<i64: 1>, scalar_prefetch = 0 : i64, scratch_operands = 1 : i64, tpu.core_type = #tpu.core_type<tc>, window_params = [{pipeline_mode = #tpu.pipeline_mode<synchronous>, transform_indices = @transform_0, window_bounds = array<i64: 64, 4>}, {pipeline_mode = #tpu.pipeline_mode<synchronous>, transform_indices = @transform_1, window_bounds = array<i64: 4, 128>}, {pipeline_mode = #tpu.pipeline_mode<synchronous>, transform_indices = @transform_2, window_bounds = array<i64: 32, 128>}, {pipeline_mode = #tpu.pipeline_mode<synchronous>, transform_indices = @transform_3, window_bounds = array<i64: 1, 128>}, {pipeline_mode = #tpu.pipeline_mode<synchronous>, transform_indices = @transform_4, window_bounds = array<i64: 64, 128>}, {pipeline_mode = #tpu.pipeline_mode<synchronous>, transform_indices = @transform_5, window_bounds = array<i64: 1, 128>}, {pipeline_mode = #tpu.pipeline_mode<synchronous>, transform_indices = @transform_6, window_bounds = array<i64: 1, 32>}, {pipeline_mode = #tpu.pipeline_mode<synchronous>, transform_indices = @transform_7, window_bounds = array<i64: 1, 32>}, {pipeline_mode = #tpu.pipeline_mode<synchronous>, transform_indices = @transform_8, window_bounds = array<i64: 1, 32>}, {pipeline_mode = #tpu.pipeline_mode<synchronous>, transform_indices = @transform_9, window_bounds = array<i64: 1, 32>}, {pipeline_mode = #tpu.pipeline_mode<synchronous>, transform_indices = @transform_10, window_bounds = array<i64: 1, 32>}, {pipeline_mode = #tpu.pipeline_mode<synchronous>, transform_indices = @transform_11, window_bounds = array<i64: 1, 1>}, {pipeline_mode = #tpu.pipeline_mode<synchronous>, transform_indices = @transform_12, window_bounds = array<i64: 8, 1>}]} {
    %c0 = arith.constant 0 : index
    %c0_0 = arith.constant 0 : index
    %0 = vector.load %arg1[%c0, %c0_0] : memref<64x4xf32, #tpu.memory_space<vmem>>, vector<64x4xf32>
    %c0_1 = arith.constant 0 : index
    %c0_2 = arith.constant 0 : index
    %1 = vector.load %arg2[%c0_1, %c0_2] : memref<4x128xf32, #tpu.memory_space<vmem>>, vector<4x128xf32>
    %cst = arith.constant dense<0.000000e+00> : vector<64x128xf32>
    %2 = tpu.matmul %0, %1, %cst {dimension_numbers = #tpu.dot_dimension_numbers<[1], [0], [0], [1], [0, 0, 1, 1], [], []>} : vector<64x4xf32>, vector<4x128xf32>, vector<64x128xf32> -> vector<64x128xf32>
    %c0_3 = arith.constant 0 : index
    %c0_4 = arith.constant 0 : index
    %3 = vector.load %arg4[%c0_3, %c0_4] : memref<1x128xf32, #tpu.memory_space<vmem>>, vector<1x128xf32>
    %4 = vector.broadcast %3 : vector<1x128xf32> to vector<64x128xf32>
    %5 = arith.addf %2, %4 : vector<64x128xf32>
    %c0_5 = arith.constant 0 : index
    %c0_6 = arith.constant 0 : index
    %6 = vector.load %arg14[%c0_5, %c0_6] : memref<64x128xf32, #tpu.memory_space<vmem>>, vector<64x128xf32>
    tpu.vector_store %arg14[%c0_5, %c0_6], %5 {strides = array<i32>} : memref<64x128xf32, #tpu.memory_space<vmem>>, vector<64x128xf32>,
    %c0_7 = arith.constant 0 : index
    %c0_8 = arith.constant 0 : index
    %7 = vector.load %arg3[%c0_7, %c0_8] : memref<32x128xf32, #tpu.memory_space<vmem>>, vector<32x128xf32>
    %c0_9 = arith.constant 0 : index
    %c0_10 = arith.constant 0 : index
    %8 = vector.load %arg5[%c0_9, %c0_10] : memref<64x128xf32, #tpu.memory_space<vmem>>, vector<64x128xf32>
    %c0_11 = arith.constant 0 : index
    %c0_12 = arith.constant 0 : index
    %9 = vector.load %arg6[%c0_11, %c0_12] : memref<1x128xf32, #tpu.memory_space<vmem>>, vector<1x128xf32>
    %10 = vector.shape_cast %9 : vector<1x128xf32> to vector<1x128xf32>
    %11 = vector.broadcast %10 : vector<1x128xf32> to vector<8x128xf32>
    %12 = tpu.iota {dimensions = array<i32: 1>} : vector<8x128xi32>
    %c64_i32 = arith.constant 64 : i32
    %13 = vector.broadcast %c64_i32 : i32 to vector<8x128xi32>
    %14 = arith.cmpi sge, %12, %13 : vector<8x128xi32>
    %c96_i32 = arith.constant 96 : i32
    %15 = vector.broadcast %c96_i32 : i32 to vector<8x128xi32>
    %16 = arith.cmpi slt, %12, %15 : vector<8x128xi32>
    %17 = arith.andi %14, %16 : vector<8x128xi1>
    %cst_13 = arith.constant 0.000000e+00 : f32
    %18 = vector.broadcast %cst_13 : f32 to vector<8x32xf32>
    %c0_i32 = arith.constant 0 : i32
    %c8_i32 = arith.constant 8 : i32
    %19 = arith.muli %c0_i32, %c8_i32 : i32
    %20 = tpu.assume_multiple %19, 8 : i32
    %21 = arith.index_cast %20 : i32 to index
    %c0_14 = arith.constant 0 : index
    %22 = vector.load %arg14[%21, %c0_14] : memref<64x128xf32, #tpu.memory_space<vmem>>, vector<8x128xf32>
    %cst_15 = arith.constant dense<0.000000e+00> : vector<8x128xf32>
    %23 = tpu.matmul %18, %7, %cst_15 {dimension_numbers = #tpu.dot_dimension_numbers<[1], [0], [0], [1], [0, 0, 1, 1], [], []>} : vector<8x32xf32>, vector<32x128xf32>, vector<8x128xf32> -> vector<8x128xf32>
    %24 = arith.addf %22, %23 : vector<8x128xf32>
    %25 = arith.negf %24 : vector<8x128xf32>
    %26 = math.exp %25 : vector<8x128xf32>
    %cst_16 = arith.constant 1.000000e+00 : f32
    %27 = vector.broadcast %cst_16 : f32 to vector<8x128xf32>
    %28 = arith.addf %27, %26 : vector<8x128xf32>
    %29 = arith.divf %27, %28 : vector<8x128xf32>
    %30 = math.tanh %24 : vector<8x128xf32>
    %31 = arith.select %17, %30, %29 : vector<8x128xi1>, vector<8x128xf32>
    %32 = vector.extract_strided_slice %31 {offsets = [0, 0], sizes = [8, 32], strides = [1, 1]} : vector<8x128xf32> to vector<8x32xf32>
    %33 = vector.extract_strided_slice %31 {offsets = [0, 32], sizes = [8, 32], strides = [1, 1]} : vector<8x128xf32> to vector<8x32xf32>
    %34 = vector.extract_strided_slice %31 {offsets = [0, 64], sizes = [8, 32], strides = [1, 1]} : vector<8x128xf32> to vector<8x32xf32>
    %35 = vector.extract_strided_slice %31 {offsets = [0, 96], sizes = [8, 32], strides = [1, 1]} : vector<8x128xf32> to vector<8x32xf32>
    %36 = arith.mulf %33, %18 : vector<8x32xf32>
    %37 = arith.mulf %32, %34 : vector<8x32xf32>
    %38 = arith.addf %36, %37 : vector<8x32xf32>
    %39 = math.tanh %38 : vector<8x32xf32>
    %40 = arith.mulf %35, %39 : vector<8x32xf32>
    %41 = tpu.concatenate %40, %18 in 1 : vector<8x32xf32>, vector<8x32xf32> -> vector<8x64xf32>
    %cst_17 = arith.constant dense<0.000000e+00> : vector<8x128xf32>
    %42 = tpu.matmul %41, %8, %cst_17 {dimension_numbers = #tpu.dot_dimension_numbers<[1], [0], [0], [1], [0, 0, 1, 1], [], []>} : vector<8x64xf32>, vector<64x128xf32>, vector<8x128xf32> -> vector<8x128xf32>
    %43 = arith.addf %42, %11 : vector<8x128xf32>
    %44 = arith.negf %43 : vector<8x128xf32>
    %45 = math.exp %44 : vector<8x128xf32>
    %cst_18 = arith.constant 1.000000e+00 : f32
    %46 = vector.broadcast %cst_18 : f32 to vector<8x128xf32>
    %47 = arith.addf %46, %45 : vector<8x128xf32>
    %48 = arith.divf %46, %47 : vector<8x128xf32>
    %49 = math.tanh %43 : vector<8x128xf32>
    %50 = arith.select %17, %49, %48 : vector<8x128xi1>, vector<8x128xf32>
    %51 = vector.extract_strided_slice %50 {offsets = [0, 0], sizes = [8, 32], strides = [1, 1]} : vector<8x128xf32> to vector<8x32xf32>
    %52 = vector.extract_strided_slice %50 {offsets = [0, 32], sizes = [8, 32], strides = [1, 1]} : vector<8x128xf32> to vector<8x32xf32>
    %53 = vector.extract_strided_slice %50 {offsets = [0, 64], sizes = [8, 32], strides = [1, 1]} : vector<8x128xf32> to vector<8x32xf32>
    %54 = vector.extract_strided_slice %50 {offsets = [0, 96], sizes = [8, 32], strides = [1, 1]} : vector<8x128xf32> to vector<8x32xf32>
    %55 = arith.mulf %52, %18 : vector<8x32xf32>
    %56 = arith.mulf %51, %53 : vector<8x32xf32>
    %57 = arith.addf %55, %56 : vector<8x32xf32>
    %58 = math.tanh %57 : vector<8x32xf32>
    %59 = arith.mulf %54, %58 : vector<8x32xf32>
    %c1_i32 = arith.constant 1 : i32
    %c8_i32_19 = arith.constant 8 : i32
    %60 = arith.muli %c1_i32, %c8_i32_19 : i32
    %61 = tpu.assume_multiple %60, 8 : i32
    %62 = arith.index_cast %61 : i32 to index
    %c0_20 = arith.constant 0 : index
    %63 = vector.load %arg14[%62, %c0_20] : memref<64x128xf32, #tpu.memory_space<vmem>>, vector<8x128xf32>
    %cst_21 = arith.constant dense<0.000000e+00> : vector<8x128xf32>
    %64 = tpu.matmul %40, %7, %cst_21 {dimension_numbers = #tpu.dot_dimension_numbers<[1], [0], [0], [1], [0, 0, 1, 1], [], []>} : vector<8x32xf32>, vector<32x128xf32>, vector<8x128xf32> -> vector<8x128xf32>
    %65 = arith.addf %63, %64 : vector<8x128xf32>
    %66 = arith.negf %65 : vector<8x128xf32>
    %67 = math.exp %66 : vector<8x128xf32>
    %cst_22 = arith.constant 1.000000e+00 : f32
    %68 = vector.broadcast %cst_22 : f32 to vector<8x128xf32>
    %69 = arith.addf %68, %67 : vector<8x128xf32>
    %70 = arith.divf %68, %69 : vector<8x128xf32>
    %71 = math.tanh %65 : vector<8x128xf32>
    %72 = arith.select %17, %71, %70 : vector<8x128xi1>, vector<8x128xf32>
    %73 = vector.extract_strided_slice %72 {offsets = [0, 0], sizes = [8, 32], strides = [1, 1]} : vector<8x128xf32> to vector<8x32xf32>
    %74 = vector.extract_strided_slice %72 {offsets = [0, 32], sizes = [8, 32], strides = [1, 1]} : vector<8x128xf32> to vector<8x32xf32>
    %75 = vector.extract_strided_slice %72 {offsets = [0, 64], sizes = [8, 32], strides = [1, 1]} : vector<8x128xf32> to vector<8x32xf32>
    %76 = vector.extract_strided_slice %72 {offsets = [0, 96], sizes = [8, 32], strides = [1, 1]} : vector<8x128xf32> to vector<8x32xf32>
    %77 = arith.mulf %74, %38 : vector<8x32xf32>
    %78 = arith.mulf %73, %75 : vector<8x32xf32>
    %79 = arith.addf %77, %78 : vector<8x32xf32>
    %80 = math.tanh %79 : vector<8x32xf32>
    %81 = arith.mulf %76, %80 : vector<8x32xf32>
    %82 = tpu.concatenate %81, %59 in 1 : vector<8x32xf32>, vector<8x32xf32> -> vector<8x64xf32>
    %cst_23 = arith.constant dense<0.000000e+00> : vector<8x128xf32>
    %83 = tpu.matmul %82, %8, %cst_23 {dimension_numbers = #tpu.dot_dimension_numbers<[1], [0], [0], [1], [0, 0, 1, 1], [], []>} : vector<8x64xf32>, vector<64x128xf32>, vector<8x128xf32> -> vector<8x128xf32>
    %84 = arith.addf %83, %11 : vector<8x128xf32>
    %85 = arith.negf %84 : vector<8x128xf32>
    %86 = math.exp %85 : vector<8x128xf32>
    %cst_24 = arith.constant 1.000000e+00 : f32
    %87 = vector.broadcast %cst_24 : f32 to vector<8x128xf32>
    %88 = arith.addf %87, %86 : vector<8x128xf32>
    %89 = arith.divf %87, %88 : vector<8x128xf32>
    %90 = math.tanh %84 : vector<8x128xf32>
    %91 = arith.select %17, %90, %89 : vector<8x128xi1>, vector<8x128xf32>
    %92 = vector.extract_strided_slice %91 {offsets = [0, 0], sizes = [8, 32], strides = [1, 1]} : vector<8x128xf32> to vector<8x32xf32>
    %93 = vector.extract_strided_slice %91 {offsets = [0, 32], sizes = [8, 32], strides = [1, 1]} : vector<8x128xf32> to vector<8x32xf32>
    %94 = vector.extract_strided_slice %91 {offsets = [0, 64], sizes = [8, 32], strides = [1, 1]} : vector<8x128xf32> to vector<8x32xf32>
    %95 = vector.extract_strided_slice %91 {offsets = [0, 96], sizes = [8, 32], strides = [1, 1]} : vector<8x128xf32> to vector<8x32xf32>
    %96 = arith.mulf %93, %57 : vector<8x32xf32>
    %97 = arith.mulf %92, %94 : vector<8x32xf32>
    %98 = arith.addf %96, %97 : vector<8x32xf32>
    %99 = math.tanh %98 : vector<8x32xf32>
    %100 = arith.mulf %95, %99 : vector<8x32xf32>
    %c2_i32 = arith.constant 2 : i32
    %c8_i32_25 = arith.constant 8 : i32
    %101 = arith.muli %c2_i32, %c8_i32_25 : i32
    %102 = tpu.assume_multiple %101, 8 : i32
    %103 = arith.index_cast %102 : i32 to index
    %c0_26 = arith.constant 0 : index
    %104 = vector.load %arg14[%103, %c0_26] : memref<64x128xf32, #tpu.memory_space<vmem>>, vector<8x128xf32>
    %cst_27 = arith.constant dense<0.000000e+00> : vector<8x128xf32>
    %105 = tpu.matmul %81, %7, %cst_27 {dimension_numbers = #tpu.dot_dimension_numbers<[1], [0], [0], [1], [0, 0, 1, 1], [], []>} : vector<8x32xf32>, vector<32x128xf32>, vector<8x128xf32> -> vector<8x128xf32>
    %106 = arith.addf %104, %105 : vector<8x128xf32>
    %107 = arith.negf %106 : vector<8x128xf32>
    %108 = math.exp %107 : vector<8x128xf32>
    %cst_28 = arith.constant 1.000000e+00 : f32
    %109 = vector.broadcast %cst_28 : f32 to vector<8x128xf32>
    %110 = arith.addf %109, %108 : vector<8x128xf32>
    %111 = arith.divf %109, %110 : vector<8x128xf32>
    %112 = math.tanh %106 : vector<8x128xf32>
    %113 = arith.select %17, %112, %111 : vector<8x128xi1>, vector<8x128xf32>
    %114 = vector.extract_strided_slice %113 {offsets = [0, 0], sizes = [8, 32], strides = [1, 1]} : vector<8x128xf32> to vector<8x32xf32>
    %115 = vector.extract_strided_slice %113 {offsets = [0, 32], sizes = [8, 32], strides = [1, 1]} : vector<8x128xf32> to vector<8x32xf32>
    %116 = vector.extract_strided_slice %113 {offsets = [0, 64], sizes = [8, 32], strides = [1, 1]} : vector<8x128xf32> to vector<8x32xf32>
    %117 = vector.extract_strided_slice %113 {offsets = [0, 96], sizes = [8, 32], strides = [1, 1]} : vector<8x128xf32> to vector<8x32xf32>
    %118 = arith.mulf %115, %79 : vector<8x32xf32>
    %119 = arith.mulf %114, %116 : vector<8x32xf32>
    %120 = arith.addf %118, %119 : vector<8x32xf32>
    %121 = math.tanh %120 : vector<8x32xf32>
    %122 = arith.mulf %117, %121 : vector<8x32xf32>
    %123 = tpu.concatenate %122, %100 in 1 : vector<8x32xf32>, vector<8x32xf32> -> vector<8x64xf32>
    %cst_29 = arith.constant dense<0.000000e+00> : vector<8x128xf32>
    %124 = tpu.matmul %123, %8, %cst_29 {dimension_numbers = #tpu.dot_dimension_numbers<[1], [0], [0], [1], [0, 0, 1, 1], [], []>} : vector<8x64xf32>, vector<64x128xf32>, vector<8x128xf32> -> vector<8x128xf32>
    %125 = arith.addf %124, %11 : vector<8x128xf32>
    %126 = arith.negf %125 : vector<8x128xf32>
    %127 = math.exp %126 : vector<8x128xf32>
    %cst_30 = arith.constant 1.000000e+00 : f32
    %128 = vector.broadcast %cst_30 : f32 to vector<8x128xf32>
    %129 = arith.addf %128, %127 : vector<8x128xf32>
    %130 = arith.divf %128, %129 : vector<8x128xf32>
    %131 = math.tanh %125 : vector<8x128xf32>
    %132 = arith.select %17, %131, %130 : vector<8x128xi1>, vector<8x128xf32>
    %133 = vector.extract_strided_slice %132 {offsets = [0, 0], sizes = [8, 32], strides = [1, 1]} : vector<8x128xf32> to vector<8x32xf32>
    %134 = vector.extract_strided_slice %132 {offsets = [0, 32], sizes = [8, 32], strides = [1, 1]} : vector<8x128xf32> to vector<8x32xf32>
    %135 = vector.extract_strided_slice %132 {offsets = [0, 64], sizes = [8, 32], strides = [1, 1]} : vector<8x128xf32> to vector<8x32xf32>
    %136 = vector.extract_strided_slice %132 {offsets = [0, 96], sizes = [8, 32], strides = [1, 1]} : vector<8x128xf32> to vector<8x32xf32>
    %137 = arith.mulf %134, %98 : vector<8x32xf32>
    %138 = arith.mulf %133, %135 : vector<8x32xf32>
    %139 = arith.addf %137, %138 : vector<8x32xf32>
    %140 = math.tanh %139 : vector<8x32xf32>
    %141 = arith.mulf %136, %140 : vector<8x32xf32>
    %c3_i32 = arith.constant 3 : i32
    %c8_i32_31 = arith.constant 8 : i32
    %142 = arith.muli %c3_i32, %c8_i32_31 : i32
    %143 = tpu.assume_multiple %142, 8 : i32
    %144 = arith.index_cast %143 : i32 to index
    %c0_32 = arith.constant 0 : index
    %145 = vector.load %arg14[%144, %c0_32] : memref<64x128xf32, #tpu.memory_space<vmem>>, vector<8x128xf32>
    %cst_33 = arith.constant dense<0.000000e+00> : vector<8x128xf32>
    %146 = tpu.matmul %122, %7, %cst_33 {dimension_numbers = #tpu.dot_dimension_numbers<[1], [0], [0], [1], [0, 0, 1, 1], [], []>} : vector<8x32xf32>, vector<32x128xf32>, vector<8x128xf32> -> vector<8x128xf32>
    %147 = arith.addf %145, %146 : vector<8x128xf32>
    %148 = arith.negf %147 : vector<8x128xf32>
    %149 = math.exp %148 : vector<8x128xf32>
    %cst_34 = arith.constant 1.000000e+00 : f32
    %150 = vector.broadcast %cst_34 : f32 to vector<8x128xf32>
    %151 = arith.addf %150, %149 : vector<8x128xf32>
    %152 = arith.divf %150, %151 : vector<8x128xf32>
    %153 = math.tanh %147 : vector<8x128xf32>
    %154 = arith.select %17, %153, %152 : vector<8x128xi1>, vector<8x128xf32>
    %155 = vector.extract_strided_slice %154 {offsets = [0, 0], sizes = [8, 32], strides = [1, 1]} : vector<8x128xf32> to vector<8x32xf32>
    %156 = vector.extract_strided_slice %154 {offsets = [0, 32], sizes = [8, 32], strides = [1, 1]} : vector<8x128xf32> to vector<8x32xf32>
    %157 = vector.extract_strided_slice %154 {offsets = [0, 64], sizes = [8, 32], strides = [1, 1]} : vector<8x128xf32> to vector<8x32xf32>
    %158 = vector.extract_strided_slice %154 {offsets = [0, 96], sizes = [8, 32], strides = [1, 1]} : vector<8x128xf32> to vector<8x32xf32>
    %159 = arith.mulf %156, %120 : vector<8x32xf32>
    %160 = arith.mulf %155, %157 : vector<8x32xf32>
    %161 = arith.addf %159, %160 : vector<8x32xf32>
    %162 = math.tanh %161 : vector<8x32xf32>
    %163 = arith.mulf %158, %162 : vector<8x32xf32>
    %164 = tpu.concatenate %163, %141 in 1 : vector<8x32xf32>, vector<8x32xf32> -> vector<8x64xf32>
    %cst_35 = arith.constant dense<0.000000e+00> : vector<8x128xf32>
    %165 = tpu.matmul %164, %8, %cst_35 {dimension_numbers = #tpu.dot_dimension_numbers<[1], [0], [0], [1], [0, 0, 1, 1], [], []>} : vector<8x64xf32>, vector<64x128xf32>, vector<8x128xf32> -> vector<8x128xf32>
    %166 = arith.addf %165, %11 : vector<8x128xf32>
    %167 = arith.negf %166 : vector<8x128xf32>
    %168 = math.exp %167 : vector<8x128xf32>
    %cst_36 = arith.constant 1.000000e+00 : f32
    %169 = vector.broadcast %cst_36 : f32 to vector<8x128xf32>
    %170 = arith.addf %169, %168 : vector<8x128xf32>
    %171 = arith.divf %169, %170 : vector<8x128xf32>
    %172 = math.tanh %166 : vector<8x128xf32>
    %173 = arith.select %17, %172, %171 : vector<8x128xi1>, vector<8x128xf32>
    %174 = vector.extract_strided_slice %173 {offsets = [0, 0], sizes = [8, 32], strides = [1, 1]} : vector<8x128xf32> to vector<8x32xf32>
    %175 = vector.extract_strided_slice %173 {offsets = [0, 32], sizes = [8, 32], strides = [1, 1]} : vector<8x128xf32> to vector<8x32xf32>
    %176 = vector.extract_strided_slice %173 {offsets = [0, 64], sizes = [8, 32], strides = [1, 1]} : vector<8x128xf32> to vector<8x32xf32>
    %177 = vector.extract_strided_slice %173 {offsets = [0, 96], sizes = [8, 32], strides = [1, 1]} : vector<8x128xf32> to vector<8x32xf32>
    %178 = arith.mulf %175, %139 : vector<8x32xf32>
    %179 = arith.mulf %174, %176 : vector<8x32xf32>
    %180 = arith.addf %178, %179 : vector<8x32xf32>
    %181 = math.tanh %180 : vector<8x32xf32>
    %182 = arith.mulf %177, %181 : vector<8x32xf32>
    %c4_i32 = arith.constant 4 : i32
    %c8_i32_37 = arith.constant 8 : i32
    %183 = arith.muli %c4_i32, %c8_i32_37 : i32
    %184 = tpu.assume_multiple %183, 8 : i32
    %185 = arith.index_cast %184 : i32 to index
    %c0_38 = arith.constant 0 : index
    %186 = vector.load %arg14[%185, %c0_38] : memref<64x128xf32, #tpu.memory_space<vmem>>, vector<8x128xf32>
    %cst_39 = arith.constant dense<0.000000e+00> : vector<8x128xf32>
    %187 = tpu.matmul %163, %7, %cst_39 {dimension_numbers = #tpu.dot_dimension_numbers<[1], [0], [0], [1], [0, 0, 1, 1], [], []>} : vector<8x32xf32>, vector<32x128xf32>, vector<8x128xf32> -> vector<8x128xf32>
    %188 = arith.addf %186, %187 : vector<8x128xf32>
    %189 = arith.negf %188 : vector<8x128xf32>
    %190 = math.exp %189 : vector<8x128xf32>
    %cst_40 = arith.constant 1.000000e+00 : f32
    %191 = vector.broadcast %cst_40 : f32 to vector<8x128xf32>
    %192 = arith.addf %191, %190 : vector<8x128xf32>
    %193 = arith.divf %191, %192 : vector<8x128xf32>
    %194 = math.tanh %188 : vector<8x128xf32>
    %195 = arith.select %17, %194, %193 : vector<8x128xi1>, vector<8x128xf32>
    %196 = vector.extract_strided_slice %195 {offsets = [0, 0], sizes = [8, 32], strides = [1, 1]} : vector<8x128xf32> to vector<8x32xf32>
    %197 = vector.extract_strided_slice %195 {offsets = [0, 32], sizes = [8, 32], strides = [1, 1]} : vector<8x128xf32> to vector<8x32xf32>
    %198 = vector.extract_strided_slice %195 {offsets = [0, 64], sizes = [8, 32], strides = [1, 1]} : vector<8x128xf32> to vector<8x32xf32>
    %199 = vector.extract_strided_slice %195 {offsets = [0, 96], sizes = [8, 32], strides = [1, 1]} : vector<8x128xf32> to vector<8x32xf32>
    %200 = arith.mulf %197, %161 : vector<8x32xf32>
    %201 = arith.mulf %196, %198 : vector<8x32xf32>
    %202 = arith.addf %200, %201 : vector<8x32xf32>
    %203 = math.tanh %202 : vector<8x32xf32>
    %204 = arith.mulf %199, %203 : vector<8x32xf32>
    %205 = tpu.concatenate %204, %182 in 1 : vector<8x32xf32>, vector<8x32xf32> -> vector<8x64xf32>
    %cst_41 = arith.constant dense<0.000000e+00> : vector<8x128xf32>
    %206 = tpu.matmul %205, %8, %cst_41 {dimension_numbers = #tpu.dot_dimension_numbers<[1], [0], [0], [1], [0, 0, 1, 1], [], []>} : vector<8x64xf32>, vector<64x128xf32>, vector<8x128xf32> -> vector<8x128xf32>
    %207 = arith.addf %206, %11 : vector<8x128xf32>
    %208 = arith.negf %207 : vector<8x128xf32>
    %209 = math.exp %208 : vector<8x128xf32>
    %cst_42 = arith.constant 1.000000e+00 : f32
    %210 = vector.broadcast %cst_42 : f32 to vector<8x128xf32>
    %211 = arith.addf %210, %209 : vector<8x128xf32>
    %212 = arith.divf %210, %211 : vector<8x128xf32>
    %213 = math.tanh %207 : vector<8x128xf32>
    %214 = arith.select %17, %213, %212 : vector<8x128xi1>, vector<8x128xf32>
    %215 = vector.extract_strided_slice %214 {offsets = [0, 0], sizes = [8, 32], strides = [1, 1]} : vector<8x128xf32> to vector<8x32xf32>
    %216 = vector.extract_strided_slice %214 {offsets = [0, 32], sizes = [8, 32], strides = [1, 1]} : vector<8x128xf32> to vector<8x32xf32>
    %217 = vector.extract_strided_slice %214 {offsets = [0, 64], sizes = [8, 32], strides = [1, 1]} : vector<8x128xf32> to vector<8x32xf32>
    %218 = vector.extract_strided_slice %214 {offsets = [0, 96], sizes = [8, 32], strides = [1, 1]} : vector<8x128xf32> to vector<8x32xf32>
    %219 = arith.mulf %216, %180 : vector<8x32xf32>
    %220 = arith.mulf %215, %217 : vector<8x32xf32>
    %221 = arith.addf %219, %220 : vector<8x32xf32>
    %222 = math.tanh %221 : vector<8x32xf32>
    %223 = arith.mulf %218, %222 : vector<8x32xf32>
    %c5_i32 = arith.constant 5 : i32
    %c8_i32_43 = arith.constant 8 : i32
    %224 = arith.muli %c5_i32, %c8_i32_43 : i32
    %225 = tpu.assume_multiple %224, 8 : i32
    %226 = arith.index_cast %225 : i32 to index
    %c0_44 = arith.constant 0 : index
    %227 = vector.load %arg14[%226, %c0_44] : memref<64x128xf32, #tpu.memory_space<vmem>>, vector<8x128xf32>
    %cst_45 = arith.constant dense<0.000000e+00> : vector<8x128xf32>
    %228 = tpu.matmul %204, %7, %cst_45 {dimension_numbers = #tpu.dot_dimension_numbers<[1], [0], [0], [1], [0, 0, 1, 1], [], []>} : vector<8x32xf32>, vector<32x128xf32>, vector<8x128xf32> -> vector<8x128xf32>
    %229 = arith.addf %227, %228 : vector<8x128xf32>
    %230 = arith.negf %229 : vector<8x128xf32>
    %231 = math.exp %230 : vector<8x128xf32>
    %cst_46 = arith.constant 1.000000e+00 : f32
    %232 = vector.broadcast %cst_46 : f32 to vector<8x128xf32>
    %233 = arith.addf %232, %231 : vector<8x128xf32>
    %234 = arith.divf %232, %233 : vector<8x128xf32>
    %235 = math.tanh %229 : vector<8x128xf32>
    %236 = arith.select %17, %235, %234 : vector<8x128xi1>, vector<8x128xf32>
    %237 = vector.extract_strided_slice %236 {offsets = [0, 0], sizes = [8, 32], strides = [1, 1]} : vector<8x128xf32> to vector<8x32xf32>
    %238 = vector.extract_strided_slice %236 {offsets = [0, 32], sizes = [8, 32], strides = [1, 1]} : vector<8x128xf32> to vector<8x32xf32>
    %239 = vector.extract_strided_slice %236 {offsets = [0, 64], sizes = [8, 32], strides = [1, 1]} : vector<8x128xf32> to vector<8x32xf32>
    %240 = vector.extract_strided_slice %236 {offsets = [0, 96], sizes = [8, 32], strides = [1, 1]} : vector<8x128xf32> to vector<8x32xf32>
    %241 = arith.mulf %238, %202 : vector<8x32xf32>
    %242 = arith.mulf %237, %239 : vector<8x32xf32>
    %243 = arith.addf %241, %242 : vector<8x32xf32>
    %244 = math.tanh %243 : vector<8x32xf32>
    %245 = arith.mulf %240, %244 : vector<8x32xf32>
    %246 = tpu.concatenate %245, %223 in 1 : vector<8x32xf32>, vector<8x32xf32> -> vector<8x64xf32>
    %cst_47 = arith.constant dense<0.000000e+00> : vector<8x128xf32>
    %247 = tpu.matmul %246, %8, %cst_47 {dimension_numbers = #tpu.dot_dimension_numbers<[1], [0], [0], [1], [0, 0, 1, 1], [], []>} : vector<8x64xf32>, vector<64x128xf32>, vector<8x128xf32> -> vector<8x128xf32>
    %248 = arith.addf %247, %11 : vector<8x128xf32>
    %249 = arith.negf %248 : vector<8x128xf32>
    %250 = math.exp %249 : vector<8x128xf32>
    %cst_48 = arith.constant 1.000000e+00 : f32
    %251 = vector.broadcast %cst_48 : f32 to vector<8x128xf32>
    %252 = arith.addf %251, %250 : vector<8x128xf32>
    %253 = arith.divf %251, %252 : vector<8x128xf32>
    %254 = math.tanh %248 : vector<8x128xf32>
    %255 = arith.select %17, %254, %253 : vector<8x128xi1>, vector<8x128xf32>
    %256 = vector.extract_strided_slice %255 {offsets = [0, 0], sizes = [8, 32], strides = [1, 1]} : vector<8x128xf32> to vector<8x32xf32>
    %257 = vector.extract_strided_slice %255 {offsets = [0, 32], sizes = [8, 32], strides = [1, 1]} : vector<8x128xf32> to vector<8x32xf32>
    %258 = vector.extract_strided_slice %255 {offsets = [0, 64], sizes = [8, 32], strides = [1, 1]} : vector<8x128xf32> to vector<8x32xf32>
    %259 = vector.extract_strided_slice %255 {offsets = [0, 96], sizes = [8, 32], strides = [1, 1]} : vector<8x128xf32> to vector<8x32xf32>
    %260 = arith.mulf %257, %221 : vector<8x32xf32>
    %261 = arith.mulf %256, %258 : vector<8x32xf32>
    %262 = arith.addf %260, %261 : vector<8x32xf32>
    %263 = math.tanh %262 : vector<8x32xf32>
    %264 = arith.mulf %259, %263 : vector<8x32xf32>
    %c6_i32 = arith.constant 6 : i32
    %c8_i32_49 = arith.constant 8 : i32
    %265 = arith.muli %c6_i32, %c8_i32_49 : i32
    %266 = tpu.assume_multiple %265, 8 : i32
    %267 = arith.index_cast %266 : i32 to index
    %c0_50 = arith.constant 0 : index
    %268 = vector.load %arg14[%267, %c0_50] : memref<64x128xf32, #tpu.memory_space<vmem>>, vector<8x128xf32>
    %cst_51 = arith.constant dense<0.000000e+00> : vector<8x128xf32>
    %269 = tpu.matmul %245, %7, %cst_51 {dimension_numbers = #tpu.dot_dimension_numbers<[1], [0], [0], [1], [0, 0, 1, 1], [], []>} : vector<8x32xf32>, vector<32x128xf32>, vector<8x128xf32> -> vector<8x128xf32>
    %270 = arith.addf %268, %269 : vector<8x128xf32>
    %271 = arith.negf %270 : vector<8x128xf32>
    %272 = math.exp %271 : vector<8x128xf32>
    %cst_52 = arith.constant 1.000000e+00 : f32
    %273 = vector.broadcast %cst_52 : f32 to vector<8x128xf32>
    %274 = arith.addf %273, %272 : vector<8x128xf32>
    %275 = arith.divf %273, %274 : vector<8x128xf32>
    %276 = math.tanh %270 : vector<8x128xf32>
    %277 = arith.select %17, %276, %275 : vector<8x128xi1>, vector<8x128xf32>
    %278 = vector.extract_strided_slice %277 {offsets = [0, 0], sizes = [8, 32], strides = [1, 1]} : vector<8x128xf32> to vector<8x32xf32>
    %279 = vector.extract_strided_slice %277 {offsets = [0, 32], sizes = [8, 32], strides = [1, 1]} : vector<8x128xf32> to vector<8x32xf32>
    %280 = vector.extract_strided_slice %277 {offsets = [0, 64], sizes = [8, 32], strides = [1, 1]} : vector<8x128xf32> to vector<8x32xf32>
    %281 = vector.extract_strided_slice %277 {offsets = [0, 96], sizes = [8, 32], strides = [1, 1]} : vector<8x128xf32> to vector<8x32xf32>
    %282 = arith.mulf %279, %243 : vector<8x32xf32>
    %283 = arith.mulf %278, %280 : vector<8x32xf32>
    %284 = arith.addf %282, %283 : vector<8x32xf32>
    %285 = math.tanh %284 : vector<8x32xf32>
    %286 = arith.mulf %281, %285 : vector<8x32xf32>
    %287 = tpu.concatenate %286, %264 in 1 : vector<8x32xf32>, vector<8x32xf32> -> vector<8x64xf32>
    %cst_53 = arith.constant dense<0.000000e+00> : vector<8x128xf32>
    %288 = tpu.matmul %287, %8, %cst_53 {dimension_numbers = #tpu.dot_dimension_numbers<[1], [0], [0], [1], [0, 0, 1, 1], [], []>} : vector<8x64xf32>, vector<64x128xf32>, vector<8x128xf32> -> vector<8x128xf32>
    %289 = arith.addf %288, %11 : vector<8x128xf32>
    %290 = arith.negf %289 : vector<8x128xf32>
    %291 = math.exp %290 : vector<8x128xf32>
    %cst_54 = arith.constant 1.000000e+00 : f32
    %292 = vector.broadcast %cst_54 : f32 to vector<8x128xf32>
    %293 = arith.addf %292, %291 : vector<8x128xf32>
    %294 = arith.divf %292, %293 : vector<8x128xf32>
    %295 = math.tanh %289 : vector<8x128xf32>
    %296 = arith.select %17, %295, %294 : vector<8x128xi1>, vector<8x128xf32>
    %297 = vector.extract_strided_slice %296 {offsets = [0, 0], sizes = [8, 32], strides = [1, 1]} : vector<8x128xf32> to vector<8x32xf32>
    %298 = vector.extract_strided_slice %296 {offsets = [0, 32], sizes = [8, 32], strides = [1, 1]} : vector<8x128xf32> to vector<8x32xf32>
    %299 = vector.extract_strided_slice %296 {offsets = [0, 64], sizes = [8, 32], strides = [1, 1]} : vector<8x128xf32> to vector<8x32xf32>
    %300 = vector.extract_strided_slice %296 {offsets = [0, 96], sizes = [8, 32], strides = [1, 1]} : vector<8x128xf32> to vector<8x32xf32>
    %301 = arith.mulf %298, %262 : vector<8x32xf32>
    %302 = arith.mulf %297, %299 : vector<8x32xf32>
    %303 = arith.addf %301, %302 : vector<8x32xf32>
    %304 = math.tanh %303 : vector<8x32xf32>
    %305 = arith.mulf %300, %304 : vector<8x32xf32>
    %c7_i32 = arith.constant 7 : i32
    %c8_i32_55 = arith.constant 8 : i32
    %306 = arith.muli %c7_i32, %c8_i32_55 : i32
    %307 = tpu.assume_multiple %306, 8 : i32
    %308 = arith.index_cast %307 : i32 to index
    %c0_56 = arith.constant 0 : index
    %309 = vector.load %arg14[%308, %c0_56] : memref<64x128xf32, #tpu.memory_space<vmem>>, vector<8x128xf32>
    %cst_57 = arith.constant dense<0.000000e+00> : vector<8x128xf32>
    %310 = tpu.matmul %286, %7, %cst_57 {dimension_numbers = #tpu.dot_dimension_numbers<[1], [0], [0], [1], [0, 0, 1, 1], [], []>} : vector<8x32xf32>, vector<32x128xf32>, vector<8x128xf32> -> vector<8x128xf32>
    %311 = arith.addf %309, %310 : vector<8x128xf32>
    %312 = arith.negf %311 : vector<8x128xf32>
    %313 = math.exp %312 : vector<8x128xf32>
    %cst_58 = arith.constant 1.000000e+00 : f32
    %314 = vector.broadcast %cst_58 : f32 to vector<8x128xf32>
    %315 = arith.addf %314, %313 : vector<8x128xf32>
    %316 = arith.divf %314, %315 : vector<8x128xf32>
    %317 = math.tanh %311 : vector<8x128xf32>
    %318 = arith.select %17, %317, %316 : vector<8x128xi1>, vector<8x128xf32>
    %319 = vector.extract_strided_slice %318 {offsets = [0, 0], sizes = [8, 32], strides = [1, 1]} : vector<8x128xf32> to vector<8x32xf32>
    %320 = vector.extract_strided_slice %318 {offsets = [0, 32], sizes = [8, 32], strides = [1, 1]} : vector<8x128xf32> to vector<8x32xf32>
    %321 = vector.extract_strided_slice %318 {offsets = [0, 64], sizes = [8, 32], strides = [1, 1]} : vector<8x128xf32> to vector<8x32xf32>
    %322 = vector.extract_strided_slice %318 {offsets = [0, 96], sizes = [8, 32], strides = [1, 1]} : vector<8x128xf32> to vector<8x32xf32>
    %323 = arith.mulf %320, %284 : vector<8x32xf32>
    %324 = arith.mulf %319, %321 : vector<8x32xf32>
    %325 = arith.addf %323, %324 : vector<8x32xf32>
    %326 = math.tanh %325 : vector<8x32xf32>
    %327 = arith.mulf %322, %326 : vector<8x32xf32>
    %328 = tpu.concatenate %327, %305 in 1 : vector<8x32xf32>, vector<8x32xf32> -> vector<8x64xf32>
    %cst_59 = arith.constant dense<0.000000e+00> : vector<8x128xf32>
    %329 = tpu.matmul %328, %8, %cst_59 {dimension_numbers = #tpu.dot_dimension_numbers<[1], [0], [0], [1], [0, 0, 1, 1], [], []>} : vector<8x64xf32>, vector<64x128xf32>, vector<8x128xf32> -> vector<8x128xf32>
    %330 = arith.addf %329, %11 : vector<8x128xf32>
    %331 = arith.negf %330 : vector<8x128xf32>
    %332 = math.exp %331 : vector<8x128xf32>
    %cst_60 = arith.constant 1.000000e+00 : f32
    %333 = vector.broadcast %cst_60 : f32 to vector<8x128xf32>
    %334 = arith.addf %333, %332 : vector<8x128xf32>
    %335 = arith.divf %333, %334 : vector<8x128xf32>
    %336 = math.tanh %330 : vector<8x128xf32>
    %337 = arith.select %17, %336, %335 : vector<8x128xi1>, vector<8x128xf32>
    %338 = vector.extract_strided_slice %337 {offsets = [0, 0], sizes = [8, 32], strides = [1, 1]} : vector<8x128xf32> to vector<8x32xf32>
    %339 = vector.extract_strided_slice %337 {offsets = [0, 32], sizes = [8, 32], strides = [1, 1]} : vector<8x128xf32> to vector<8x32xf32>
    %340 = vector.extract_strided_slice %337 {offsets = [0, 64], sizes = [8, 32], strides = [1, 1]} : vector<8x128xf32> to vector<8x32xf32>
    %341 = vector.extract_strided_slice %337 {offsets = [0, 96], sizes = [8, 32], strides = [1, 1]} : vector<8x128xf32> to vector<8x32xf32>
    %342 = arith.mulf %339, %303 : vector<8x32xf32>
    %343 = arith.mulf %338, %340 : vector<8x32xf32>
    %344 = arith.addf %342, %343 : vector<8x32xf32>
    %345 = math.tanh %344 : vector<8x32xf32>
    %346 = arith.mulf %341, %345 : vector<8x32xf32>
    %c8_i32_61 = arith.constant 8 : i32
    %c0_62 = arith.constant 0 : index
    %c0_63 = arith.constant 0 : index
    %347 = vector.load %arg10[%c0_62, %c0_63] : memref<1x32xf32, #tpu.memory_space<vmem>>, vector<1x32xf32>
    %cst_64 = arith.constant 9.99999974E-6 : f32
    %348 = vector.broadcast %cst_64 : f32 to vector<1x32xf32>
    %349 = arith.addf %347, %348 : vector<1x32xf32>
    %350 = math.rsqrt %349 : vector<1x32xf32>
    %c0_65 = arith.constant 0 : index
    %c0_66 = arith.constant 0 : index
    %351 = vector.load %arg9[%c0_65, %c0_66] : memref<1x32xf32, #tpu.memory_space<vmem>>, vector<1x32xf32>
    %352 = vector.broadcast %351 : vector<1x32xf32> to vector<8x32xf32>
    %353 = arith.subf %346, %352 : vector<8x32xf32>
    %354 = vector.broadcast %350 : vector<1x32xf32> to vector<8x32xf32>
    %355 = arith.mulf %353, %354 : vector<8x32xf32>
    %c0_67 = arith.constant 0 : index
    %c0_68 = arith.constant 0 : index
    %356 = vector.load %arg7[%c0_67, %c0_68] : memref<1x32xf32, #tpu.memory_space<vmem>>, vector<1x32xf32>
    %357 = vector.broadcast %356 : vector<1x32xf32> to vector<8x32xf32>
    %358 = arith.mulf %355, %357 : vector<8x32xf32>
    %c0_69 = arith.constant 0 : index
    %c0_70 = arith.constant 0 : index
    %359 = vector.load %arg8[%c0_69, %c0_70] : memref<1x32xf32, #tpu.memory_space<vmem>>, vector<1x32xf32>
    %360 = vector.broadcast %359 : vector<1x32xf32> to vector<8x32xf32>
    %361 = arith.addf %358, %360 : vector<8x32xf32>
    %c0_71 = arith.constant 0 : index
    %c0_72 = arith.constant 0 : index
    %362 = vector.load %arg11[%c0_71, %c0_72] : memref<1x32xf32, #tpu.memory_space<vmem>>, vector<1x32xf32>
    %363 = vector.broadcast %362 : vector<1x32xf32> to vector<8x32xf32>
    %364 = arith.mulf %361, %363 : vector<8x32xf32>
    %cst_73 = arith.constant dense<0.000000e+00> : vector<8xf32>
    %365 = vector.multi_reduction <add>, %364, %cst_73 [1] : vector<8x32xf32> to vector<8xf32>
    %366 = vector.shape_cast %365 : vector<8xf32> to vector<8x1xf32>
    %c0_74 = arith.constant 0 : index
    %c0_75 = arith.constant 0 : index
    %367 = vector.load %arg12[%c0_74, %c0_75] : memref<1x1xf32, #tpu.memory_space<vmem>>, vector<1x1xf32>
    %368 = vector.broadcast %367 : vector<1x1xf32> to vector<8x1xf32>
    %369 = arith.addf %366, %368 : vector<8x1xf32>
    %c0_76 = arith.constant 0 : index
    %c0_77 = arith.constant 0 : index
    %370 = vector.load %arg13[%c0_76, %c0_77] : memref<8x1xf32, #tpu.memory_space<vmem>>, vector<8x1xf32>
    tpu.vector_store %arg13[%c0_76, %c0_77], %369 {strides = array<i32>} : memref<8x1xf32, #tpu.memory_space<vmem>>, vector<8x1xf32>,
    return
  }
  func.func @transform_0(%arg0: i32) -> (i32, i32) {
    %c0_i32 = arith.constant 0 : i32
    %c0_i32_0 = arith.constant 0 : i32
    %c0_i32_1 = arith.constant 0 : i32
    return %c0_i32, %c0_i32_0 : i32, i32
  }
  func.func @transform_1(%arg0: i32) -> (i32, i32) {
    %c0_i32 = arith.constant 0 : i32
    %c0_i32_0 = arith.constant 0 : i32
    %c0_i32_1 = arith.constant 0 : i32
    return %c0_i32, %c0_i32_0 : i32, i32
  }
  func.func @transform_2(%arg0: i32) -> (i32, i32) {
    %c0_i32 = arith.constant 0 : i32
    %c0_i32_0 = arith.constant 0 : i32
    %c0_i32_1 = arith.constant 0 : i32
    return %c0_i32, %c0_i32_0 : i32, i32
  }
  func.func @transform_3(%arg0: i32) -> (i32, i32) {
    %c0_i32 = arith.constant 0 : i32
    %c0_i32_0 = arith.constant 0 : i32
    %c0_i32_1 = arith.constant 0 : i32
    return %c0_i32, %c0_i32_0 : i32, i32
  }
  func.func @transform_4(%arg0: i32) -> (i32, i32) {
    %c0_i32 = arith.constant 0 : i32
    %c0_i32_0 = arith.constant 0 : i32
    %c0_i32_1 = arith.constant 0 : i32
    return %c0_i32, %c0_i32_0 : i32, i32
  }
  func.func @transform_5(%arg0: i32) -> (i32, i32) {
    %c0_i32 = arith.constant 0 : i32
    %c0_i32_0 = arith.constant 0 : i32
    %c0_i32_1 = arith.constant 0 : i32
    return %c0_i32, %c0_i32_0 : i32, i32
  }
  func.func @transform_6(%arg0: i32) -> (i32, i32) {
    %c0_i32 = arith.constant 0 : i32
    %c0_i32_0 = arith.constant 0 : i32
    %c0_i32_1 = arith.constant 0 : i32
    return %c0_i32, %c0_i32_0 : i32, i32
  }
  func.func @transform_7(%arg0: i32) -> (i32, i32) {
    %c0_i32 = arith.constant 0 : i32
    %c0_i32_0 = arith.constant 0 : i32
    %c0_i32_1 = arith.constant 0 : i32
    return %c0_i32, %c0_i32_0 : i32, i32
  }
  func.func @transform_8(%arg0: i32) -> (i32, i32) {
    %c0_i32 = arith.constant 0 : i32
    %c0_i32_0 = arith.constant 0 : i32
    %c0_i32_1 = arith.constant 0 : i32
    return %c0_i32, %c0_i32_0 : i32, i32
  }
  func.func @transform_9(%arg0: i32) -> (i32, i32) {
    %c0_i32 = arith.constant 0 : i32
    %c0_i32_0 = arith.constant 0 : i32
    %c0_i32_1 = arith.constant 0 : i32
    return %c0_i32, %c0_i32_0 : i32, i32
  }
  func.func @transform_10(%arg0: i32) -> (i32, i32) {
    %c0_i32 = arith.constant 0 : i32
    %c0_i32_0 = arith.constant 0 : i32
    %c0_i32_1 = arith.constant 0 : i32
    return %c0_i32, %c0_i32_0 : i32, i32
  }
  func.func @transform_11(%arg0: i32) -> (i32, i32) {
    %c0_i32 = arith.constant 0 : i32
    %c0_i32_0 = arith.constant 0 : i32
    %c0_i32_1 = arith.constant 0 : i32
    return %c0_i32, %c0_i32_0 : i32, i32
  }
  func.func @transform_12(%arg0: i32) -> (i32, i32) {
    %c0_i32 = arith.constant 0 : i32
    %c0_i32_0 = arith.constant 0 : i32
    %c0_i32_1 = arith.constant 0 : i32
    return %c0_i32, %c0_i32_0 : i32, i32
  }
}

</mosaic_0001>

<bundles_post_ra>
// kernel: stock_lstm_forward.1
= control target key start
LH: loop header
LB: loop body
LE: loop exit
PB: predicated region body
PF: predicated region fallthrough
CT: control target
= control target key end

     0   :  { %vm84_vm0 = vcmask 1043456   ;;  %vm59_vm1 = vcmask 31744   ;;  %v2655_v0 = vmov 0.0|0.0   ;;  %vm2656_vm2 = vmmov 0   ;;  %s2658_s17 = smov 64   ;;  %s2659_s18 = smov 32   ;;  %s3188_s2 = inlined_call_operand.vmem [shape: f32[32,128], index: 2, kind: input, shape index: {}]   ;;  %s3189_s1 = inlined_call_operand.vmem [shape: f32[4,128], index: 1, kind: input, shape index: {}]   ;;  %s3190_s0 = inlined_call_operand.vmem [shape: f32[64,4], index: 0, kind: input, shape index: {}]   ;;  %s3191_s3 = inlined_call_operand.vmem [shape: f32[1,128], index: 3, kind: input, shape index: {}]   ;;  %s3192_s4 = inlined_call_operand.vmem [shape: f32[64,128], index: 4, kind: input, shape index: {}]   ;;  %s3193_s5 = inlined_call_operand.vmem [shape: f32[1,128], index: 5, kind: input, shape index: {}]   ;;  %s3194_s8 = inlined_call_operand.vmem [shape: f32[1,32], index: 8, kind: input, shape index: {}]   ;;  %s3195_s6 = inlined_call_operand.vmem [shape: f32[1,32], index: 6, kind: input, shape index: {}]   ;;  %s3196_s10 = inlined_call_operand.vmem [shape: f32[1,32], index: 10, kind: input, shape index: {}]   ;;  %s3197_s9 = inlined_call_operand.vmem [shape: f32[1,32], index: 9, kind: input, shape index: {}]   ;;  %s3198_s7 = inlined_call_operand.vmem [shape: f32[1,32], index: 7, kind: input, shape index: {}]   ;;  %s3199_s11 = inlined_call_operand.<no memory space> [shape: f32[1,1], index: 11, kind: input, shape index: {}]   ;;  %s3200_s12 = inlined_call_operand.vmem [shape: f32[8,1], index: 12, kind: output, shape index: {}]  }
   0x1   :  { %2374 = vmatprep.subr.bf16.mxu1 %v2655_v0  ;;  %v201_v1 = vld [vmem:[%s3188_s2] sm:$0xff]  ;;  %v202_v2 = vld [vmem:[%s3188_s2 + $0x8] sm:$0xff]  ;;  %v203_v7 = vld [vmem:[%s3188_s2 + $0x10] sm:$0xff]  ;;  %v2657_v8 = vmov 0.0   ;;  %v220_v20 = vlaneseq  ;;  %vm226_vm6 = vcmask 261120   ;;  %vm331_vm7 = vcmask 523264  }
   0x2   :  { %v51_v3 = vld [vmem:[%s3189_s1] sm:$0xf]  ;;  %v2736_v4 = vpack.c.bf16 %v202_v2, %v201_v1  ;;  %v44_v6 = vld [vmem:[%s3190_s0 + $0x8] sm:$0xff]  ;;  %2142 = vmatprep.mubr.msk.f32.mxu1 %vm2656_vm2, %v2657_v8  ;;  %v204_v9 = vld [vmem:[%s3188_s2 + $0x18] sm:$0xff]  ;;  %s2660_s13 = smov 96   ;;  %vm1946_vm8 = vcmask 7168  }
   0x3   :  { %2120 = vmatprep.subr.msk.mxu0 %vm84_vm0, %v51_v3  ;;  %v43_v5 = vld [vmem:[%s3190_s0] sm:$0xff]  ;;  %v2757_v10 = vpack.c.bf16 %v204_v9, %v203_v7  ;;  %v221_v22 = vand.u32 127, %v220_v20  ;;  %v45_v32 = vld [vmem:[%s3190_s0 + $0x10] sm:$0xff]  ;;  %v46_v33 = vld [vmem:[%s3190_s0 + $0x18] sm:$0xff] }
   0x4   :  { %2121 = vmatpush3.msk.msra.mxu0 %vm84_vm0, %v51_v3  ;;  %2122 = vmatprep.mubr.msk.f32.mxu0 %vm59_vm1, %v43_v5  ;;  %v2771_v12 = vld [vmem:[%s3191_s3] ss:$0 sm:$0xff]  ;;  %v206_v36 = vld [vmem:[%s3192_s4 + $0x8] sm:$0xff]  ;;  %v207_v37 = vld [vmem:[%s3192_s4 + $0x10] sm:$0xff] }
   0x5   :  { %2376 = vmatpush3.bf16.msra.mxu1 %v2736_v4  ;;  %2123 = vmatmul.mubr.msk.f32.vlgmr.msra.gmra.mrb[0].mxu0 %vm59_vm1, %v44_v6  ;;  %vm222_vm3 = vcmp.ge.s32.totalorder %v221_v22, 64  ;;  %vm223_vm4 = vcmp.lt.s32.totalorder %v221_v22, 96  ;;  %v47_v34 = vld [vmem:[%s3190_s0 + $0x20] sm:$0xff]  ;;  %v208_v39 = vld [vmem:[%s3192_s4 + $0x18] sm:$0xff]  ;;  %v48_v40 = vld [vmem:[%s3190_s0 + $0x28] sm:$0xff] }
   0x6   :  { %2377 = vmatprep.subr.bf16.mxu1 %v2655_v0  ;;  %2380 = vmatprep.subr.bf16.mxu0 %v2655_v0  ;;  %vm2775_vm5 = vmand %vm222_vm3, %vm223_vm4  ;;  %v205_v35 = vld [vmem:[%s3192_s4] sm:$0xff]  ;;  %v2816_v41 = vpack.c.bf16 %v208_v39, %v207_v37  ;;  %v49_v42 = vld [vmem:[%s3190_s0 + $0x30] sm:$0xff] }
   0x7   :  { %2125 = vmatprep.mubr.msk.f32.mxu0 %vm59_vm1, %v45_v32  ;;  %v2805_v38 = vpack.c.bf16 %v206_v36, %v205_v35  ;;  %v209_v43 = vld [vmem:[%s3192_s4 + $0x20] sm:$0xff]  ;;  %v210_v44 = vld [vmem:[%s3192_s4 + $0x28] sm:$0xff]  ;;  %v50_v45 = vld [vmem:[%s3190_s0 + $0x38] sm:$0xff] }
   0x8   :  { %v2836_v46 = vpack.c.bf16 %v210_v44, %v209_v43  ;;  %v211_v47 = vld [vmem:[%s3192_s4 + $0x30] sm:$0xff]  ;;  %v212_v48 = vld [vmem:[%s3192_s4 + $0x38] sm:$0xff]  ;;  %v2892_v61 = vld [vmem:[%s3193_s5] ss:$0 sm:$0xff] }
   0x9   :  { %2379 = vmatpush3.bf16.msra.mxu1 %v2757_v10  ;;  %2126 = vmatmul.mubr.msk.f32.gmra.mrb[2].mxu0 %vm59_vm1, %v46_v33  ;;  %v2852_v50 = vpack.c.bf16 %v212_v48, %v211_v47  ;;  %v1997_v23 = vld [vmem:[%s3196_s10] ss:$0 sm:$0xff] }
   0xa   :  { %2398 = vmatprep.subr.bf16.mxu1 %v2655_v0  ;;  %2128 = vmatprep.mubr.msk.f32.mxu0 %vm59_vm1, %v47_v34 }
   0xb   :  { %2382 = vmatpush3.bf16.msra.mxu0 %v2805_v38 }
   0xc   :  { %2143 = vmatmul.mubr.f32.vlgmr.msra.gmra.mrb[0].mxu1 %v2657_v8  ;;  %2383 = vmatprep.subr.bf16.mxu0 %v2655_v0 }
   0xd   :  { %2191 = vmatprep.mubr.msk.f32.mxu1 %vm2656_vm2, %v2657_v8  ;;  %2400 = vmatpush3.bf16.msra.mxu1 %v2805_v38 }
   0xe   :  { %2401 = vmatprep.subr.bf16.mxu1 %v2655_v0  ;;  %2129 = vmatmul.mubr.msk.f32.gmra.mrb[4].mxu0 %vm59_vm1, %v48_v40 }
   0xf   :  { %2131 = vmatprep.mubr.msk.f32.mxu0 %vm59_vm1, %v49_v42  ;;  %2385 = vmatpush3.bf16.msra.mxu0 %v2816_v41 }
  0x10   :  { %2386 = vmatprep.subr.bf16.mxu0 %v2655_v0 }
  0x11   :  { %2403 = vmatpush3.bf16.msra.mxu1 %v2816_v41 }
  0x12   :  { %2404 = vmatprep.subr.bf16.mxu1 %v2655_v0  ;;  %2132 = vmatmul.mubr.msk.f32.gmra.mrb[6].mxu0 %vm59_vm1, %v50_v45 }
  0x13   :  { %2161 = vmatprep.mubr.msk.f32.mxu0 %vm2656_vm2, %v2657_v8  ;;  %2388 = vmatpush3.bf16.msra.mxu0 %v2836_v46 }
  0x14   :  { %2389 = vmatprep.subr.bf16.mxu0 %v2655_v0 }
  0x15   :  { %2406 = vmatpush3.bf16.msra.mxu1 %v2836_v46 }
  0x16   :  { %2407 = vmatprep.subr.bf16.mxu1 %v2655_v0 }
  0x17   :  { %2391 = vmatpush3.bf16.msra.mxu0 %v2852_v50 }
  0x18   :  { %2392 = vmatprep.subr.bf16.mxu0 %v2655_v0 }
  0x19   :  { %2409 = vmatpush3.bf16.msra.mxu1 %v2852_v50 }
  0x1a   :  { %2428 = vmatprep.subr.bf16.mxu1 %v2655_v0 }
  0xd8   :  { %v2766_v11 = vpop.f32.mrb[0].mxu0 }
  0xd9   :  { %v154_v13 = vpop.f32.mrb[1].mxu0  ;;  %v160_v3 = vadd.f32 %v2766_v11, %v2771_v12 }
  0xda   :  { %v155_v14 = vadd.f32 %v2771_v12, %v154_v13 }
  0xdc   :  { %v2862_v53 = vpop.f32.mrb[2].mxu0 }
  0xdd   :  { %v2864_v54 = vpop.f32.mrb[3].mxu0 }
  0xde   :  { %v165_v45 = vadd.f32 %v2771_v12, %v2864_v54 }
  0xdf   :  { %v296_v15 = vpop.f32.mrb[0].mxu1 }
  0xe0   :  { %v300_v16 = vadd.f32 %v296_v15, %v155_v14  ;;  %v2144_v17 = vpop.f32.mrb[1].mxu1 }
  0xe1   :  { %v2866_v55 = vpop.f32.mrb[4].mxu0 }
  0xe2   :  { %v1963_v18 = vmul.f32 -1.442695, %v300_v16  ;;  %v2868_v56 = vpop.f32.mrb[5].mxu0 }
  0xe4   :  { %2524 = vpow2.f32 %v1963_v18 }
  0xe5   :  { %2526 = vtanh.f32 %v300_v16  ;;  %v2870_v57 = vpop.f32.mrb[6].mxu0 }
  0xe6   :  { %v2872_v58 = vpop.f32.mrb[7].mxu0 }
  0xee   :  { %v2525_v19 = vpop.eup %2524 }
  0xef   :  { %v304_v21 = vadd.f32 1.0, %v2525_v19  ;;  %v2527_v24 = vpop.eup %2526 }
  0xf1   :  { %2528 = vrcp.f32 %v304_v21 }
  0xfb   :  { %v2529_v25 = vpop.eup %2528 }
  0xfc   :  { %v308_v26 = vsel %vm2775_vm5, %v2527_v24, %v2529_v25 }
  0xfd   :  { %311 = vrot.lane.b32.xlu0 %v308_v26, %s2658_s17  ;;  %v309_v29 = vmul.f32 0.0, %v308_v26 }
 0x16f   :  { %v312_v27 = vpop.permute.xlu0 %311 }
 0x170   :  { %v314_v28 = vmul.f32 %v312_v27, %v308_v26 }
 0x172   :  { %316 = vrot.lane.b32.xlu0 %v314_v28, %s2659_s18 }
 0x1e4   :  { %v317_v30 = vpop.permute.xlu0 %316 }
 0x1e5   :  { %v2783_v31 = vadd.f32 %v317_v30, %v309_v29 }
 0x1e7   :  { %2530 = vtanh.f32 %v2783_v31 }
 0x1f1   :  { %v2531_v49 = vpop.eup %2530 }
 0x1f2   :  { %322 = vrot.lane.b32.xlu1 %v2531_v49, %s2658_s17 }
 0x264   :  { %v323_v51 = vpop.permute.xlu1 %322 }
 0x265   :  { %v325_v52 = vmul.f32 %v323_v51, %v308_v26 }
 0x267   :  { %327 = vrot.lane.b32.xlu1 %v325_v52, %s2659_s18 }
 0x2d9   :  { %v328_v59 = vpop.permute.xlu1 %327 }
 0x2da   :  { %v330_v60 = vsel %vm226_vm6, %v328_v59, 0.0 }
 0x2db   :  { %2162 = vmatmul.mubr.msk.f32.vlgmr.msra.gmra.mrb[8].mxu0 %vm331_vm7, %v330_v60 }
 0x2dc   :  { %2394 = vmatpush3.bf16.msra.mxu0 %v2736_v4  ;;  %2172 = vmatprep.mubr.msk.f32.mxu0 %vm2656_vm2, %v2657_v8 }
 0x2dd   :  { %2395 = vmatprep.subr.bf16.mxu0 %v2655_v0 }
 0x2e0   :  { %2397 = vmatpush3.bf16.msra.mxu0 %v2757_v10 }
 0x2e1   :  { %2410 = vmatprep.subr.bf16.mxu0 %v2655_v0 }
 0x2e3   :  { %2173 = vmatmul.mubr.msk.f32.vlgmr.msra.gmra.mrb[10].mxu0 %vm226_vm6, %v328_v59 }
 0x2e4   :  { %2412 = vmatpush3.bf16.msra.mxu0 %v2736_v4  ;;  %2202 = vmatprep.mubr.msk.f32.mxu0 %vm2656_vm2, %v2657_v8 }
 0x2e5   :  { %2413 = vmatprep.subr.bf16.mxu0 %v2655_v0 }
 0x2e8   :  { %2415 = vmatpush3.bf16.msra.mxu0 %v2757_v10 }
 0x2e9   :  { %2416 = vmatprep.subr.bf16.mxu0 %v2655_v0 }
 0x3ae   :  { %v401_v62 = vpop.f32.mrb[8].mxu0 }
 0x3af   :  { %v402_v63 = vadd.f32 %v2892_v61, %v401_v62  ;;  %v2163_v1 = vpop.f32.mrb[9].mxu0 }
 0x3b1   :  { %v1965_v2 = vmul.f32 -1.442695, %v402_v63 }
 0x3b3   :  { %2532 = vpow2.f32 %v1965_v2 }
 0x3b6   :  { %v500_v5 = vpop.f32.mrb[10].mxu0 }
 0x3b7   :  { %v504_v6 = vadd.f32 %v500_v5, %v160_v3  ;;  %v2174_v7 = vpop.f32.mrb[11].mxu0 }
 0x3b9   :  { %v1967_v9 = vmul.f32 -1.442695, %v504_v6 }
 0x3bb   :  { %2534 = vpow2.f32 %v1967_v9 }
 0x3bc   :  { %2536 = vtanh.f32 %v402_v63 }
 0x3bd   :  { %v2533_v13 = vpop.eup %2532 }
 0x3be   :  { %v408_v14 = vadd.f32 1.0, %v2533_v13 }
 0x3c0   :  { %2538 = vrcp.f32 %v408_v14 }
 0x3c1   :  { %2540 = vtanh.f32 %v504_v6 }
 0x3c5   :  { %v2535_v15 = vpop.eup %2534 }
 0x3c6   :  { %v508_v16 = vadd.f32 1.0, %v2535_v15  ;;  %v2537_v17 = vpop.eup %2536 }
 0x3c8   :  { %2542 = vrcp.f32 %v508_v16 }
 0x3ca   :  { %v2539_v18 = vpop.eup %2538 }
 0x3cb   :  { %v412_v19 = vsel %vm2775_vm5, %v2537_v17, %v2539_v18  ;;  %v2541_v11 = vpop.eup %2540 }
 0x3cc   :  { %415 = vrot.lane.b32.xlu0 %v412_v19, %s2658_s17  ;;  %v413_v28 = vmul.f32 0.0, %v412_v19 }
 0x3d2   :  { %v2543_v21 = vpop.eup %2542 }
 0x3d3   :  { %v512_v22 = vsel %vm2775_vm5, %v2541_v11, %v2543_v21 }
 0x3d4   :  { %515 = vrot.lane.b32.xlu1 %v512_v22, %s2658_s17  ;;  %v513_v32 = vmul.f32 %v512_v22, %v2783_v31 }
 0x43e   :  { %v416_v24 = vpop.permute.xlu0 %415 }
 0x43f   :  { %v418_v25 = vmul.f32 %v416_v24, %v412_v19 }
 0x441   :  { %420 = vrot.lane.b32.xlu0 %v418_v25, %s2659_s18 }
 0x446   :  { %v516_v26 = vpop.permute.xlu1 %515 }
 0x447   :  { %v518_v27 = vmul.f32 %v516_v26, %v512_v22 }
 0x449   :  { %520 = vrot.lane.b32.xlu1 %v518_v27, %s2659_s18 }
 0x4b3   :  { %v421_v29 = vpop.permute.xlu0 %420 }
 0x4b4   :  { %v2905_v30 = vadd.f32 %v421_v29, %v413_v28 }
 0x4b6   :  { %2544 = vtanh.f32 %v2905_v30 }
 0x4bb   :  { %v521_v33 = vpop.permute.xlu1 %520 }
 0x4bc   :  { %v2909_v34 = vadd.f32 %v521_v33, %v513_v32 }
 0x4be   :  { %2546 = vtanh.f32 %v2909_v34 }
 0x4c0   :  { %v2545_v35 = vpop.eup %2544 }
 0x4c1   :  { %426 = vrot.lane.b32.xlu0 %v2545_v35, %s2658_s17  ;;  %v170_v35 = vadd.f32 %v2862_v53, %v2771_v12 }
 0x4c8   :  { %v2547_v36 = vpop.eup %2546 }
 0x4c9   :  { %526 = vrot.lane.b32.xlu1 %v2547_v36, %s2658_s17 }
 0x533   :  { %v427_v37 = vpop.permute.xlu0 %426 }
 0x534   :  { %v429_v39 = vmul.f32 %v427_v37, %v412_v19 }
 0x536   :  { %535 = vrot.lane.b32.xlu1 %v429_v39, %s2658_s17 }
 0x53b   :  { %v527_v40 = vpop.permute.xlu1 %526 }
 0x53c   :  { %v529_v42 = vmul.f32 %v527_v40, %v512_v22 }
 0x53e   :  { %531 = vrot.lane.b32.xlu0 %v529_v42, %s2659_s18 }
 0x5a8   :  { %v536_v31 = vpop.permute.xlu1 %535 }
 0x5b0   :  { %v532_v43 = vpop.permute.xlu0 %531 }
 0x5b1   :  { %v538_v44 = vsel %vm226_vm6, %v532_v43, %v536_v31  ;;  %2203 = vmatmul.mubr.msk.f32.vlgmr.msra.gmra.mrb[12].mxu0 %vm226_vm6, %v532_v43 }
 0x5b2   :  { %2192 = vmatmul.mubr.msk.f32.vlgmr.msra.gmra.mrb[2].mxu1 %vm331_vm7, %v538_v44  ;;  %2418 = vmatpush3.bf16.msra.mxu0 %v2805_v38 }
 0x5b3   :  { %2419 = vmatprep.subr.bf16.mxu0 %v2655_v0  ;;  %2430 = vmatpush3.bf16.msra.mxu1 %v2736_v4 }
 0x5b4   :  { %2431 = vmatprep.subr.bf16.mxu1 %v2655_v0  ;;  %2232 = vmatprep.mubr.msk.f32.mxu1 %vm2656_vm2, %v2657_v8 }
 0x5b5   :  { %2221 = vmatprep.mubr.msk.f32.mxu0 %vm2656_vm2, %v2657_v8 }
 0x5b6   :  { %2421 = vmatpush3.bf16.msra.mxu0 %v2816_v41 }
 0x5b7   :  { %2422 = vmatprep.subr.bf16.mxu0 %v2655_v0  ;;  %2433 = vmatpush3.bf16.msra.mxu1 %v2757_v10 }
 0x5b8   :  { %2434 = vmatprep.subr.bf16.mxu1 %v2655_v0 }
 0x5ba   :  { %2424 = vmatpush3.bf16.msra.mxu0 %v2836_v46 }
 0x5bb   :  { %2425 = vmatprep.subr.bf16.mxu0 %v2655_v0 }
 0x5be   :  { %2427 = vmatpush3.bf16.msra.mxu0 %v2852_v50 }
 0x5bf   :  { %2446 = vmatprep.subr.bf16.mxu0 %v2655_v0 }
 0x684   :  { %v707_v47 = vpop.f32.mrb[12].mxu0 }
 0x685   :  { %v711_v48 = vadd.f32 %v707_v47, %v165_v45  ;;  %v608_v49 = vpop.f32.mrb[2].mxu1  ;;  %v2204_v51 = vpop.f32.mrb[13].mxu0 }
 0x686   :  { %v609_v52 = vadd.f32 %v2892_v61, %v608_v49  ;;  %v2193_v59 = vpop.f32.mrb[3].mxu1 }
 0x687   :  { %v1971_v60 = vmul.f32 -1.442695, %v711_v48 }
 0x688   :  { %v1969_v62 = vmul.f32 -1.442695, %v609_v52 }
 0x689   :  { %2548 = vpow2.f32 %v1971_v60 }
 0x68a   :  { %2550 = vpow2.f32 %v1969_v62 }
 0x68b   :  { %2552 = vtanh.f32 %v711_v48 }
 0x68c   :  { %2554 = vtanh.f32 %v609_v52 }
 0x693   :  { %v2549_v63 = vpop.eup %2548 }
 0x694   :  { %v2551_v1 = vpop.eup %2550  ;;  %v715_v2 = vadd.f32 1.0, %v2549_v63 }
 0x695   :  { %v615_v3 = vadd.f32 1.0, %v2551_v1  ;;  %v2553_v54 = vpop.eup %2552 }
 0x696   :  { %2556 = vrcp.f32 %v715_v2  ;;  %v2555_v5 = vpop.eup %2554 }
 0x697   :  { %2558 = vrcp.f32 %v615_v3 }
 0x6a0   :  { %v2557_v6 = vpop.eup %2556 }
 0x6a1   :  { %v2559_v7 = vpop.eup %2558  ;;  %v719_v9 = vsel %vm2775_vm5, %v2553_v54, %v2557_v6 }
 0x6a2   :  { %722 = vrot.lane.b32.xlu1 %v719_v9, %s2658_s17  ;;  %v619_v13 = vsel %vm2775_vm5, %v2555_v5, %v2559_v7  ;;  %v720_v18 = vmul.f32 %v719_v9, %v2909_v34 }
 0x6a3   :  { %622 = vrot.lane.b32.xlu0 %v619_v13, %s2658_s17  ;;  %v620_v11 = vmul.f32 %v619_v13, %v2905_v30 }
 0x714   :  { %v723_v14 = vpop.permute.xlu1 %722 }
 0x715   :  { %v725_v15 = vmul.f32 %v723_v14, %v719_v9  ;;  %v623_v16 = vpop.permute.xlu0 %622 }
 0x716   :  { %v625_v17 = vmul.f32 %v623_v16, %v619_v13 }
 0x717   :  { %727 = vrot.lane.b32.xlu1 %v725_v15, %s2659_s18 }
 0x718   :  { %627 = vrot.lane.b32.xlu0 %v625_v17, %s2659_s18 }
 0x789   :  { %v728_v19 = vpop.permute.xlu1 %727 }
 0x78a   :  { %v2948_v21 = vadd.f32 %v728_v19, %v720_v18  ;;  %v628_v22 = vpop.permute.xlu0 %627 }
 0x78b   :  { %v2950_v24 = vadd.f32 %v628_v22, %v620_v11 }
 0x78c   :  { %2560 = vtanh.f32 %v2948_v21 }
 0x78d   :  { %2562 = vtanh.f32 %v2950_v24 }
 0x796   :  { %v2561_v25 = vpop.eup %2560 }
 0x797   :  { %v2563_v26 = vpop.eup %2562  ;;  %733 = vrot.lane.b32.xlu1 %v2561_v25, %s2658_s17 }
 0x798   :  { %633 = vrot.lane.b32.xlu0 %v2563_v26, %s2658_s17 }
 0x809   :  { %v734_v27 = vpop.permute.xlu1 %733 }
 0x80a   :  { %v736_v28 = vmul.f32 %v734_v27, %v719_v9  ;;  %v634_v29 = vpop.permute.xlu0 %633 }
 0x80b   :  { %v636_v32 = vmul.f32 %v634_v29, %v619_v13 }
 0x80c   :  { %738 = vrot.lane.b32.xlu0 %v736_v28, %s2659_s18 }
 0x80d   :  { %742 = vrot.lane.b32.xlu1 %v636_v32, %s2658_s17 }
 0x87e   :  { %v739_v30 = vpop.permute.xlu0 %738 }
 0x87f   :  { %2233 = vmatmul.mubr.msk.f32.vlgmr.msra.gmra.mrb[4].mxu1 %vm226_vm6, %v739_v30  ;;  %v743_v33 = vpop.permute.xlu1 %742 }
 0x880   :  { %v745_v34 = vsel %vm226_vm6, %v739_v30, %v743_v33  ;;  %2436 = vmatpush3.bf16.msra.mxu1 %v2805_v38  ;;  %2251 = vmatprep.mubr.msk.f32.mxu1 %vm2656_vm2, %v2657_v8 }
 0x881   :  { %2222 = vmatmul.mubr.msk.f32.vlgmr.msra.gmra.mrb[14].mxu0 %vm331_vm7, %v745_v34  ;;  %2437 = vmatprep.subr.bf16.mxu1 %v2655_v0 }
 0x882   :  { %2448 = vmatpush3.bf16.msra.mxu0 %v2736_v4  ;;  %2262 = vmatprep.mubr.msk.f32.mxu0 %vm2656_vm2, %v2657_v8 }
 0x883   :  { %2449 = vmatprep.subr.bf16.mxu0 %v2655_v0 }
 0x884   :  { %2439 = vmatpush3.bf16.msra.mxu1 %v2816_v41 }
 0x885   :  { %2440 = vmatprep.subr.bf16.mxu1 %v2655_v0 }
 0x886   :  { %2451 = vmatpush3.bf16.msra.mxu0 %v2757_v10 }
 0x887   :  { %2452 = vmatprep.subr.bf16.mxu0 %v2655_v0 }
 0x888   :  { %2442 = vmatpush3.bf16.msra.mxu1 %v2836_v46 }
 0x889   :  { %2443 = vmatprep.subr.bf16.mxu1 %v2655_v0 }
 0x88c   :  { %2445 = vmatpush3.bf16.msra.mxu1 %v2852_v50 }
 0x88d   :  { %2464 = vmatprep.subr.bf16.mxu1 %v2655_v0 }
 0x952   :  { %v914_v36 = vpop.f32.mrb[4].mxu1 }
 0x953   :  { %v918_v37 = vadd.f32 %v914_v36, %v170_v35  ;;  %v2234_v39 = vpop.f32.mrb[5].mxu1 }
 0x954   :  { %v815_v40 = vpop.f32.mrb[14].mxu0 }
 0x955   :  { %v1975_v42 = vmul.f32 -1.442695, %v918_v37  ;;  %v816_v31 = vadd.f32 %v2892_v61, %v815_v40  ;;  %v2223_v43 = vpop.f32.mrb[15].mxu0 }
 0x957   :  { %2564 = vpow2.f32 %v1975_v42  ;;  %v1973_v44 = vmul.f32 -1.442695, %v816_v31 }
 0x959   :  { %2566 = vpow2.f32 %v1973_v44 }
 0x95a   :  { %2568 = vtanh.f32 %v918_v37 }
 0x961   :  { %v2565_v45 = vpop.eup %2564 }
 0x962   :  { %v922_v47 = vadd.f32 1.0, %v2565_v45 }
 0x963   :  { %v2567_v48 = vpop.eup %2566 }
 0x964   :  { %2570 = vrcp.f32 %v922_v47  ;;  %v822_v49 = vadd.f32 1.0, %v2567_v48  ;;  %v2569_v53 = vpop.eup %2568 }
 0x965   :  { %2572 = vtanh.f32 %v816_v31 }
 0x966   :  { %2574 = vrcp.f32 %v822_v49 }
 0x96e   :  { %v2571_v51 = vpop.eup %2570 }
 0x96f   :  { %v2573_v52 = vpop.eup %2572  ;;  %v926_v59 = vsel %vm2775_vm5, %v2569_v53, %v2571_v51 }
 0x970   :  { %v2575_v60 = vpop.eup %2574  ;;  %929 = vrot.lane.b32.xlu1 %v926_v59, %s2658_s17  ;;  %v927_v54 = vmul.f32 %v926_v59, %v2948_v21 }
 0x971   :  { %v826_v62 = vsel %vm2775_vm5, %v2573_v52, %v2575_v60 }
 0x972   :  { %829 = vrot.lane.b32.xlu0 %v826_v62, %s2658_s17  ;;  %v827_v7 = vmul.f32 %v826_v62, %v2950_v24  ;;  %v175_v24 = vadd.f32 %v2771_v12, %v2868_v56 }
 0x9e2   :  { %v930_v63 = vpop.permute.xlu1 %929 }
 0x9e3   :  { %v932_v1 = vmul.f32 %v930_v63, %v926_v59 }
 0x9e4   :  { %v830_v2 = vpop.permute.xlu0 %829 }
 0x9e5   :  { %v832_v3 = vmul.f32 %v830_v2, %v826_v62  ;;  %934 = vrot.lane.b32.xlu1 %v932_v1, %s2659_s18 }
 0x9e7   :  { %834 = vrot.lane.b32.xlu0 %v832_v3, %s2659_s18 }
 0xa57   :  { %v935_v5 = vpop.permute.xlu1 %934 }
 0xa58   :  { %v2989_v6 = vadd.f32 %v935_v5, %v927_v54 }
 0xa59   :  { %v835_v9 = vpop.permute.xlu0 %834 }
 0xa5a   :  { %2576 = vtanh.f32 %v2989_v6  ;;  %v2993_v13 = vadd.f32 %v835_v9, %v827_v7  ;;  %v180_v9 = vadd.f32 %v2866_v55, %v2771_v12 }
 0xa5c   :  { %2578 = vtanh.f32 %v2993_v13 }
 0xa64   :  { %v2577_v14 = vpop.eup %2576 }
 0xa65   :  { %940 = vrot.lane.b32.xlu1 %v2577_v14, %s2658_s17 }
 0xa66   :  { %v2579_v15 = vpop.eup %2578 }
 0xa67   :  { %840 = vrot.lane.b32.xlu0 %v2579_v15, %s2658_s17 }
 0xad7   :  { %v941_v16 = vpop.permute.xlu1 %940 }
 0xad8   :  { %v943_v17 = vmul.f32 %v941_v16, %v926_v59 }
 0xad9   :  { %v841_v18 = vpop.permute.xlu0 %840 }
 0xada   :  { %v843_v19 = vmul.f32 %v841_v18, %v826_v62  ;;  %945 = vrot.lane.b32.xlu0 %v943_v17, %s2659_s18 }
 0xadc   :  { %949 = vrot.lane.b32.xlu1 %v843_v19, %s2658_s17 }
 0xb4c   :  { %v946_v11 = vpop.permute.xlu0 %945 }
 0xb4d   :  { %2263 = vmatmul.mubr.msk.f32.vlgmr.msra.gmra.mrb[16].mxu0 %vm226_vm6, %v946_v11 }
 0xb4e   :  { %v950_v21 = vpop.permute.xlu1 %949  ;;  %2454 = vmatpush3.bf16.msra.mxu0 %v2805_v38  ;;  %2281 = vmatprep.mubr.msk.f32.mxu0 %vm2656_vm2, %v2657_v8 }
 0xb4f   :  { %v952_v22 = vsel %vm226_vm6, %v946_v11, %v950_v21  ;;  %2455 = vmatprep.subr.bf16.mxu0 %v2655_v0 }
 0xb50   :  { %2252 = vmatmul.mubr.msk.f32.vlgmr.msra.gmra.mrb[6].mxu1 %vm331_vm7, %v952_v22 }
 0xb51   :  { %2466 = vmatpush3.bf16.msra.mxu1 %v2736_v4  ;;  %2292 = vmatprep.mubr.msk.f32.mxu1 %vm2656_vm2, %v2657_v8 }
 0xb52   :  { %2457 = vmatpush3.bf16.msra.mxu0 %v2816_v41  ;;  %2467 = vmatprep.subr.bf16.mxu1 %v2655_v0 }
 0xb53   :  { %2458 = vmatprep.subr.bf16.mxu0 %v2655_v0 }
 0xb55   :  { %2469 = vmatpush3.bf16.msra.mxu1 %v2757_v10 }
 0xb56   :  { %2460 = vmatpush3.bf16.msra.mxu0 %v2836_v46  ;;  %2470 = vmatprep.subr.bf16.mxu1 %v2655_v0 }
 0xb57   :  { %2461 = vmatprep.subr.bf16.mxu0 %v2655_v0 }
 0xb5a   :  { %2463 = vmatpush3.bf16.msra.mxu0 %v2852_v50 }
 0xb5b   :  { %2482 = vmatprep.subr.bf16.mxu0 %v2655_v0 }
 0xc20   :  { %v1121_v25 = vpop.f32.mrb[16].mxu0 }
 0xc21   :  { %v1125_v26 = vadd.f32 %v1121_v25, %v175_v24  ;;  %v2264_v27 = vpop.f32.mrb[17].mxu0 }
 0xc23   :  { %v1979_v28 = vmul.f32 -1.442695, %v1125_v26  ;;  %v1022_v29 = vpop.f32.mrb[6].mxu1 }
 0xc24   :  { %v1023_v32 = vadd.f32 %v2892_v61, %v1022_v29  ;;  %v2253_v30 = vpop.f32.mrb[7].mxu1 }
 0xc25   :  { %2580 = vpow2.f32 %v1979_v28 }
 0xc26   :  { %v1977_v33 = vmul.f32 -1.442695, %v1023_v32 }
 0xc28   :  { %2582 = vpow2.f32 %v1977_v33 }
 0xc29   :  { %2584 = vtanh.f32 %v1125_v26 }
 0xc2f   :  { %v2581_v34 = vpop.eup %2580 }
 0xc30   :  { %v1129_v35 = vadd.f32 1.0, %v2581_v34 }
 0xc32   :  { %v2583_v36 = vpop.eup %2582  ;;  %2586 = vrcp.f32 %v1129_v35 }
 0xc33   :  { %v1029_v37 = vadd.f32 1.0, %v2583_v36  ;;  %2588 = vtanh.f32 %v1023_v32  ;;  %v2585_v56 = vpop.eup %2584 }
 0xc35   :  { %2590 = vrcp.f32 %v1029_v37 }
 0xc3c   :  { %v2587_v39 = vpop.eup %2586 }
 0xc3d   :  { %v1133_v40 = vsel %vm2775_vm5, %v2585_v56, %v2587_v39  ;;  %v2589_v42 = vpop.eup %2588 }
 0xc3e   :  { %1136 = vrot.lane.b32.xlu1 %v1133_v40, %s2658_s17  ;;  %v1134_v49 = vmul.f32 %v1133_v40, %v2989_v6 }
 0xc3f   :  { %v2591_v31 = vpop.eup %2590 }
 0xc40   :  { %v1033_v43 = vsel %vm2775_vm5, %v2589_v42, %v2591_v31 }
 0xc41   :  { %1036 = vrot.lane.b32.xlu0 %v1033_v43, %s2658_s17  ;;  %v1034_v52 = vmul.f32 %v1033_v43, %v2993_v13 }
 0xcb0   :  { %v1137_v44 = vpop.permute.xlu1 %1136 }
 0xcb1   :  { %v1139_v45 = vmul.f32 %v1137_v44, %v1133_v40 }
 0xcb3   :  { %v1037_v47 = vpop.permute.xlu0 %1036  ;;  %1141 = vrot.lane.b32.xlu1 %v1139_v45, %s2659_s18 }
 0xcb4   :  { %v1039_v48 = vmul.f32 %v1037_v47, %v1033_v43 }
 0xcb6   :  { %1041 = vrot.lane.b32.xlu0 %v1039_v48, %s2659_s18 }
 0xd25   :  { %v1142_v53 = vpop.permute.xlu1 %1141 }
 0xd26   :  { %v3031_v51 = vadd.f32 %v1142_v53, %v1134_v49 }
 0xd28   :  { %2592 = vtanh.f32 %v3031_v51  ;;  %v1042_v59 = vpop.permute.xlu0 %1041 }
 0xd29   :  { %v3035_v60 = vadd.f32 %v1042_v59, %v1034_v52 }
 0xd2b   :  { %2594 = vtanh.f32 %v3035_v60 }
 0xd32   :  { %v2593_v62 = vpop.eup %2592 }
 0xd33   :  { %1147 = vrot.lane.b32.xlu1 %v2593_v62, %s2658_s17 }
 0xd35   :  { %v2595_v63 = vpop.eup %2594 }
 0xd36   :  { %1047 = vrot.lane.b32.xlu0 %v2595_v63, %s2658_s17 }
 0xda5   :  { %v1148_v1 = vpop.permute.xlu1 %1147 }
 0xda6   :  { %v1150_v2 = vmul.f32 %v1148_v1, %v1133_v40 }
 0xda8   :  { %v1048_v3 = vpop.permute.xlu0 %1047  ;;  %1152 = vrot.lane.b32.xlu0 %v1150_v2, %s2659_s18 }
 0xda9   :  { %v1050_v54 = vmul.f32 %v1048_v3, %v1033_v43 }
 0xdab   :  { %1156 = vrot.lane.b32.xlu1 %v1050_v54, %s2658_s17 }
 0xe1a   :  { %v1153_v5 = vpop.permute.xlu0 %1152 }
 0xe1b   :  { %2293 = vmatmul.mubr.msk.f32.vlgmr.msra.gmra.mrb[8].mxu1 %vm226_vm6, %v1153_v5 }
 0xe1c   :  { %2472 = vmatpush3.bf16.msra.mxu1 %v2805_v38  ;;  %2311 = vmatprep.mubr.msk.f32.mxu1 %vm2656_vm2, %v2657_v8 }
 0xe1d   :  { %v1157_v6 = vpop.permute.xlu1 %1156  ;;  %2473 = vmatprep.subr.bf16.mxu1 %v2655_v0 }
 0xe1e   :  { %v1159_v7 = vsel %vm226_vm6, %v1153_v5, %v1157_v6 }
 0xe1f   :  { %2282 = vmatmul.mubr.msk.f32.vlgmr.msra.gmra.mrb[18].mxu0 %vm331_vm7, %v1159_v7 }
 0xe20   :  { %2484 = vmatpush3.bf16.msra.mxu0 %v2736_v4  ;;  %2475 = vmatpush3.bf16.msra.mxu1 %v2816_v41 }
 0xe21   :  { %2485 = vmatprep.subr.bf16.mxu0 %v2655_v0  ;;  %2476 = vmatprep.subr.bf16.mxu1 %v2655_v0 }
 0xe22   :  { %2322 = vmatprep.mubr.msk.f32.mxu0 %vm2656_vm2, %v2657_v8 }
 0xe24   :  { %2487 = vmatpush3.bf16.msra.mxu0 %v2757_v10  ;;  %2478 = vmatpush3.bf16.msra.mxu1 %v2836_v46 }
 0xe25   :  { %2479 = vmatprep.subr.bf16.mxu1 %v2655_v0  ;;  %2488 = vmatprep.subr.bf16.mxu0 %v2655_v0 }
 0xe28   :  { %2481 = vmatpush3.bf16.msra.mxu1 %v2852_v50 }
 0xe29   :  { %2500 = vmatprep.subr.bf16.mxu1 %v2655_v0 }
 0xeee   :  { %v1328_v13 = vpop.f32.mrb[8].mxu1 }
 0xeef   :  { %v1332_v14 = vadd.f32 %v1328_v13, %v180_v9  ;;  %v2294_v15 = vpop.f32.mrb[9].mxu1 }
 0xef1   :  { %v1983_v16 = vmul.f32 -1.442695, %v1332_v14 }
 0xef2   :  { %v1229_v17 = vpop.f32.mrb[18].mxu0 }
 0xef3   :  { %2596 = vpow2.f32 %v1983_v16  ;;  %v1230_v18 = vadd.f32 %v2892_v61, %v1229_v17  ;;  %v2283_v19 = vpop.f32.mrb[19].mxu0 }
 0xef5   :  { %v1981_v11 = vmul.f32 -1.442695, %v1230_v18 }
 0xef7   :  { %2598 = vpow2.f32 %v1981_v11 }
 0xef8   :  { %2600 = vtanh.f32 %v1332_v14 }
 0xefd   :  { %v2597_v21 = vpop.eup %2596 }
 0xefe   :  { %v1336_v22 = vadd.f32 1.0, %v2597_v21 }
 0xf00   :  { %2602 = vrcp.f32 %v1336_v22 }
 0xf01   :  { %v2599_v24 = vpop.eup %2598  ;;  %2604 = vtanh.f32 %v1230_v18 }
 0xf02   :  { %v1236_v25 = vadd.f32 1.0, %v2599_v24  ;;  %v2601_v55 = vpop.eup %2600 }
 0xf04   :  { %2606 = vrcp.f32 %v1236_v25 }
 0xf0a   :  { %v2603_v26 = vpop.eup %2602 }
 0xf0b   :  { %v1340_v27 = vsel %vm2775_vm5, %v2601_v55, %v2603_v26  ;;  %v2605_v28 = vpop.eup %2604 }
 0xf0c   :  { %1343 = vrot.lane.b32.xlu1 %v1340_v27, %s2658_s17  ;;  %v1341_v36 = vmul.f32 %v1340_v27, %v3031_v51 }
 0xf0e   :  { %v2607_v29 = vpop.eup %2606 }
 0xf0f   :  { %v1240_v32 = vsel %vm2775_vm5, %v2605_v28, %v2607_v29 }
 0xf10   :  { %1243 = vrot.lane.b32.xlu0 %v1240_v32, %s2658_s17  ;;  %v1241_v39 = vmul.f32 %v1240_v32, %v3035_v60 }
 0xf7e   :  { %v1344_v30 = vpop.permute.xlu1 %1343 }
 0xf7f   :  { %v1346_v33 = vmul.f32 %v1344_v30, %v1340_v27 }
 0xf81   :  { %1348 = vrot.lane.b32.xlu1 %v1346_v33, %s2659_s18 }
 0xf82   :  { %v1244_v34 = vpop.permute.xlu0 %1243 }
 0xf83   :  { %v1246_v35 = vmul.f32 %v1244_v34, %v1240_v32 }
 0xf85   :  { %1248 = vrot.lane.b32.xlu0 %v1246_v35, %s2659_s18 }
 0xff3   :  { %v1349_v37 = vpop.permute.xlu1 %1348 }
 0xff4   :  { %v3073_v56 = vadd.f32 %v1349_v37, %v1341_v36 }
 0xff6   :  { %2608 = vtanh.f32 %v3073_v56 }
 0xff7   :  { %v1249_v40 = vpop.permute.xlu0 %1248 }
 0xff8   :  { %v3077_v42 = vadd.f32 %v1249_v40, %v1241_v39 }
 0xffa   :  { %2610 = vtanh.f32 %v3077_v42 }
0x1000   :  { %v2609_v31 = vpop.eup %2608 }
0x1001   :  { %1354 = vrot.lane.b32.xlu1 %v2609_v31, %s2658_s17 }
0x1004   :  { %v2611_v43 = vpop.eup %2610 }
0x1005   :  { %1254 = vrot.lane.b32.xlu0 %v2611_v43, %s2658_s17 }
0x1073   :  { %v1355_v44 = vpop.permute.xlu1 %1354 }
0x1074   :  { %v1357_v45 = vmul.f32 %v1355_v44, %v1340_v27 }
0x1076   :  { %1359 = vrot.lane.b32.xlu0 %v1357_v45, %s2659_s18 }
0x1077   :  { %v1255_v47 = vpop.permute.xlu0 %1254 }
0x1078   :  { %v1257_v48 = vmul.f32 %v1255_v47, %v1240_v32 }
0x107a   :  { %1363 = vrot.lane.b32.xlu1 %v1257_v48, %s2658_s17 }
0x10e8   :  { %v1360_v49 = vpop.permute.xlu0 %1359 }
0x10e9   :  { %2323 = vmatmul.mubr.msk.f32.vlgmr.msra.gmra.mrb[20].mxu0 %vm226_vm6, %v1360_v49 }
0x10ea   :  { %2490 = vmatpush3.bf16.msra.mxu0 %v2805_v38  ;;  %2341 = vmatprep.mubr.msk.f32.mxu0 %vm2656_vm2, %v2657_v8 }
0x10eb   :  { %2491 = vmatprep.subr.bf16.mxu0 %v2655_v0 }
0x10ec   :  { %v1364_v53 = vpop.permute.xlu1 %1363 }
0x10ed   :  { %v1366_v51 = vsel %vm226_vm6, %v1360_v49, %v1364_v53 }
0x10ee   :  { %2312 = vmatmul.mubr.msk.f32.vlgmr.msra.gmra.mrb[10].mxu1 %vm331_vm7, %v1366_v51  ;;  %2493 = vmatpush3.bf16.msra.mxu0 %v2816_v41 }
0x10ef   :  { %2502 = vmatpush3.bf16.msra.mxu1 %v2736_v4  ;;  %2494 = vmatprep.subr.bf16.mxu0 %v2655_v0  ;;  %v185_v4 = vadd.f32 %v2771_v12, %v2872_v58 }
0x10f0   :  { %2503 = vmatprep.subr.bf16.mxu1 %v2655_v0  ;;  %2352 = vmatprep.mubr.msk.f32.mxu1 %vm2656_vm2, %v2657_v8 }
0x10f2   :  { %2496 = vmatpush3.bf16.msra.mxu0 %v2836_v46 }
0x10f3   :  { %2505 = vmatpush3.bf16.msra.mxu1 %v2757_v10  ;;  %2497 = vmatprep.subr.bf16.mxu0 %v2655_v0 }
0x10f4   :  { %2506 = vmatprep.subr.bf16.mxu1 %v2655_v0 }
0x10f6   :  { %2499 = vmatpush3.bf16.msra.mxu0 %v2852_v50 }
0x11bc   :  { %v1535_v52 = vpop.f32.mrb[20].mxu0 }
0x11bd   :  { %v1539_v59 = vadd.f32 %v1535_v52, %v185_v4  ;;  %v2324_v60 = vpop.f32.mrb[21].mxu0 }
0x11bf   :  { %v1987_v62 = vmul.f32 -1.442695, %v1539_v59 }
0x11c1   :  { %2612 = vpow2.f32 %v1987_v62  ;;  %v1436_v63 = vpop.f32.mrb[10].mxu1 }
0x11c2   :  { %v1437_v1 = vadd.f32 %v2892_v61, %v1436_v63  ;;  %v2313_v2 = vpop.f32.mrb[11].mxu1 }
0x11c4   :  { %v1985_v3 = vmul.f32 -1.442695, %v1437_v1 }
0x11c6   :  { %2614 = vpow2.f32 %v1985_v3 }
0x11c7   :  { %2616 = vtanh.f32 %v1539_v59 }
0x11cb   :  { %v2613_v10 = vpop.eup %2612 }
0x11cc   :  { %v1543_v54 = vadd.f32 1.0, %v2613_v10 }
0x11ce   :  { %2618 = vrcp.f32 %v1543_v54 }
0x11cf   :  { %2620 = vtanh.f32 %v1437_v1 }
0x11d0   :  { %v2615_v5 = vpop.eup %2614 }
0x11d1   :  { %v1443_v6 = vadd.f32 1.0, %v2615_v5  ;;  %v2617_v12 = vpop.eup %2616 }
0x11d3   :  { %2622 = vrcp.f32 %v1443_v6 }
0x11d8   :  { %v2619_v58 = vpop.eup %2618 }
0x11d9   :  { %v1547_v7 = vsel %vm2775_vm5, %v2617_v12, %v2619_v58  ;;  %v2621_v9 = vpop.eup %2620 }
0x11da   :  { %1550 = vrot.lane.b32.xlu1 %v1547_v7, %s2658_s17  ;;  %v1548_v19 = vmul.f32 %v1547_v7, %v3073_v56 }
0x11dd   :  { %v2623_v13 = vpop.eup %2622 }
0x11de   :  { %v1447_v14 = vsel %vm2775_vm5, %v2621_v9, %v2623_v13 }
0x11df   :  { %1450 = vrot.lane.b32.xlu0 %v1447_v14, %s2658_s17  ;;  %v1448_v22 = vmul.f32 %v1447_v14, %v3077_v42 }
0x124c   :  { %v1551_v15 = vpop.permute.xlu1 %1550 }
0x124d   :  { %v1553_v16 = vmul.f32 %v1551_v15, %v1547_v7 }
0x124f   :  { %1555 = vrot.lane.b32.xlu1 %v1553_v16, %s2659_s18 }
0x1251   :  { %v1451_v17 = vpop.permute.xlu0 %1450 }
0x1252   :  { %v1453_v18 = vmul.f32 %v1451_v17, %v1447_v14 }
0x1254   :  { %1455 = vrot.lane.b32.xlu0 %v1453_v18, %s2659_s18 }
0x12c1   :  { %v1556_v11 = vpop.permute.xlu1 %1555 }
0x12c2   :  { %v3114_v21 = vadd.f32 %v1556_v11, %v1548_v19 }
0x12c4   :  { %2624 = vtanh.f32 %v3114_v21 }
0x12c6   :  { %v1456_v24 = vpop.permute.xlu0 %1455 }
0x12c7   :  { %v3118_v25 = vadd.f32 %v1456_v24, %v1448_v22  ;;  %v1995_v24 = vld [vmem:[%s3195_s6] ss:$0 sm:$0xff] }
0x12c9   :  { %2626 = vtanh.f32 %v3118_v25 }
0x12ce   :  { %v2625_v55 = vpop.eup %2624 }
0x12cf   :  { %1561 = vrot.lane.b32.xlu1 %v2625_v55, %s2658_s17 }
0x12d3   :  { %v2627_v26 = vpop.eup %2626 }
0x12d4   :  { %1461 = vrot.lane.b32.xlu0 %v2627_v26, %s2658_s17 }
0x1341   :  { %v1562_v27 = vpop.permute.xlu1 %1561 }
0x1342   :  { %v1564_v28 = vmul.f32 %v1562_v27, %v1547_v7 }
0x1344   :  { %1566 = vrot.lane.b32.xlu0 %v1564_v28, %s2659_s18 }
0x1346   :  { %v1462_v29 = vpop.permute.xlu0 %1461 }
0x1347   :  { %v1464_v32 = vmul.f32 %v1462_v29, %v1447_v14  ;;  %v1894_v29 = vshrl.u32 %v220_v20, 7  ;;  %v17_v20 = vstv %s3199_s11 }
0x1348   :  { %18 = vst [vmem:[#allocation3] sm:$0x1] %v17_v20 }
0x1349   :  { %1570 = vrot.lane.b32.xlu1 %v1464_v32, %s2658_s17  ;;  %v1895_v32 = vsub.s32 0, %v1894_v29 }
0x13b6   :  { %v1567_v30 = vpop.permute.xlu0 %1566 }
0x13b7   :  { %2353 = vmatmul.mubr.msk.f32.vlgmr.msra.gmra.mrb[12].mxu1 %vm226_vm6, %v1567_v30 }
0x13b8   :  { %2508 = vmatpush3.bf16.msra.mxu1 %v2805_v38  ;;  %2371 = vmatprep.mubr.msk.f32.mxu1 %vm2656_vm2, %v2657_v8  ;;  %v2654_v8 = vld [vmem:[%s3191_s3] ss:$0 sm:$0xff] }
0x13b9   :  { %2509 = vmatprep.subr.bf16.mxu1 %v2655_v0  ;;  %v190_v38 = vadd.f32 %v2654_v8, %v2870_v57  ;;  %v1996_v8 = vld [vmem:[%s3198_s7] ss:$0 sm:$0xff] }
0x13bb   :  { %v1571_v33 = vpop.permute.xlu1 %1570 }
0x13bc   :  { %v1573_v34 = vsel %vm226_vm6, %v1567_v30, %v1571_v33  ;;  %2511 = vmatpush3.bf16.msra.mxu1 %v2816_v41 }
0x13bd   :  { %2342 = vmatmul.mubr.msk.f32.vlgmr.msra.gmra.mrb[22].mxu0 %vm331_vm7, %v1573_v34  ;;  %2512 = vmatprep.subr.bf16.mxu1 %v2655_v0 }
0x13c0   :  { %2514 = vmatpush3.bf16.msra.mxu1 %v2836_v46 }
0x13c1   :  { %2515 = vmatprep.subr.bf16.mxu1 %v2655_v0 }
0x13c4   :  { %2517 = vmatpush3.bf16.msra.mxu1 %v2852_v50 }
0x148a   :  { %v1742_v35 = vpop.f32.mrb[12].mxu1 }
0x148b   :  { %v1746_v36 = vadd.f32 %v1742_v35, %v190_v38  ;;  %v2354_v37 = vpop.f32.mrb[13].mxu1 }
0x148d   :  { %v1991_v41 = vmul.f32 -1.442695, %v1746_v36 }
0x148f   :  { %2628 = vpow2.f32 %v1991_v41 }
0x1490   :  { %v1643_v56 = vpop.f32.mrb[22].mxu0 }
0x1491   :  { %v1644_v39 = vadd.f32 %v2892_v61, %v1643_v56  ;;  %v2343_v40 = vpop.f32.mrb[23].mxu0 }
0x1493   :  { %v1989_v46 = vmul.f32 -1.442695, %v1644_v39 }
0x1495   :  { %2630 = vpow2.f32 %v1989_v46 }
0x1496   :  { %2632 = vtanh.f32 %v1746_v36 }
0x1499   :  { %v2629_v0 = vpop.eup %2628 }
0x149a   :  { %v1750_v42 = vadd.f32 1.0, %v2629_v0 }
0x149c   :  { %2634 = vrcp.f32 %v1750_v42 }
0x149d   :  { %2636 = vtanh.f32 %v1644_v39 }
0x149f   :  { %v2631_v50 = vpop.eup %2630 }
0x14a0   :  { %v1650_v31 = vadd.f32 1.0, %v2631_v50  ;;  %v2633_v57 = vpop.eup %2632 }
0x14a2   :  { %2638 = vrcp.f32 %v1650_v31 }
0x14a6   :  { %v2635_v43 = vpop.eup %2634 }
0x14a7   :  { %v1754_v44 = vsel %vm2775_vm5, %v2633_v57, %v2635_v43  ;;  %v2637_v45 = vpop.eup %2636  ;;  %v1998_v43 = vld [vmem:[#allocation3] ss:$0 sm:$0xff] }
0x14a8   :  { %1757 = vrot.lane.b32.xlu1 %v1754_v44, %s2658_s17  ;;  %v1755_v52 = vmul.f32 %v1754_v44, %v3114_v21 }
0x14ac   :  { %v2639_v47 = vpop.eup %2638 }
0x14ad   :  { %v1654_v48 = vsel %vm2775_vm5, %v2637_v45, %v2639_v47 }
0x14ae   :  { %1657 = vrot.lane.b32.xlu0 %v1654_v48, %s2658_s17  ;;  %v1655_v62 = vmul.f32 %v1654_v48, %v3118_v25  ;;  %v1879_v25 = vld [vmem:[%s3197_s9] sm:$0x1] }
0x14af   :  { %v1880_v55 = vadd.f32 1e-05, %v1879_v25 }
0x151a   :  { %v1758_v49 = vpop.permute.xlu1 %1757 }
0x151b   :  { %v1760_v53 = vmul.f32 %v1758_v49, %v1754_v44 }
0x151d   :  { %1762 = vrot.lane.b32.xlu1 %v1760_v53, %s2659_s18 }
0x1520   :  { %v1658_v51 = vpop.permute.xlu0 %1657 }
0x1521   :  { %v1660_v4 = vmul.f32 %v1658_v51, %v1654_v48 }
0x1523   :  { %1662 = vrot.lane.b32.xlu0 %v1660_v4, %s2659_s18 }
0x158f   :  { %v1763_v59 = vpop.permute.xlu1 %1762 }
0x1590   :  { %v1765_v60 = vadd.f32 %v1763_v59, %v1755_v52 }
0x1592   :  { %2640 = vtanh.f32 %v1765_v60 }
0x1595   :  { %v1663_v63 = vpop.permute.xlu0 %1662 }
0x1596   :  { %v1665_v1 = vadd.f32 %v1663_v63, %v1655_v62 }
0x1598   :  { %2642 = vtanh.f32 %v1665_v1 }
0x159c   :  { %v2641_v2 = vpop.eup %2640 }
0x159d   :  { %1768 = vrot.lane.b32.xlu1 %v2641_v2, %s2658_s17 }
0x15a2   :  { %v2643_v3 = vpop.eup %2642 }
0x15a3   :  { %1668 = vrot.lane.b32.xlu0 %v2643_v3, %s2658_s17 }
0x160f   :  { %v1769_v10 = vpop.permute.xlu1 %1768 }
0x1610   :  { %v1771_v54 = vmul.f32 %v1769_v10, %v1754_v44 }
0x1612   :  { %1773 = vrot.lane.b32.xlu0 %v1771_v54, %s2659_s18 }
0x1615   :  { %v1669_v5 = vpop.permute.xlu0 %1668 }
0x1616   :  { %v1671_v6 = vmul.f32 %v1669_v5, %v1654_v48 }
0x1618   :  { %1777 = vrot.lane.b32.xlu1 %v1671_v6, %s2658_s17 }
0x1684   :  { %v1774_v12 = vpop.permute.xlu0 %1773 }
0x168a   :  { %v1778_v58 = vpop.permute.xlu1 %1777 }
0x168b   :  { %v1780_v7 = vsel %vm226_vm6, %v1774_v12, %v1778_v58 }
0x168c   :  { %2372 = vmatmul.mubr.msk.f32.vlgmr.msra.gmra.mrb[14].mxu1 %vm331_vm7, %v1780_v7 }
0x175f   :  { %v1850_v9 = vpop.f32.mrb[14].mxu1 }
0x1760   :  { %v1851_v13 = vadd.f32 %v2892_v61, %v1850_v9  ;;  %v2373_v14 = vpop.f32.mrb[15].mxu1  ;;  %v1994_v61 = vld [vmem:[%s3194_s8] ss:$0 sm:$0xff] }
0x1762   :  { %v1993_v15 = vmul.f32 -1.442695, %v1851_v13 }
0x1764   :  { %2644 = vpow2.f32 %v1993_v15 }
0x1765   :  { %2646 = vtanh.f32 %v1851_v13 }
0x176e   :  { %v2645_v16 = vpop.eup %2644 }
0x176f   :  { %v1857_v17 = vadd.f32 1.0, %v2645_v16  ;;  %v2647_v18 = vpop.eup %2646 }
0x1771   :  { %2648 = vrcp.f32 %v1857_v17 }
0x1772   :  { %2650 = vrsqrt.f32 %v1880_v55 }
0x177b   :  { %v2649_v19 = vpop.eup %2648 }
0x177c   :  { %v1861_v11 = vsel %vm2775_vm5, %v2647_v18, %v2649_v19  ;;  %v2651_v30 = vpop.eup %2650 }
0x177d   :  { %1864 = vrot.lane.b32.xlu0 %v1861_v11, %s2658_s17  ;;  %v1862_v26 = vmul.f32 %v1861_v11, %v1665_v1  ;;  %v1896_v34 = vrot.slane %v2651_v30, %v1895_v32 }
0x17ef   :  { %v1865_v21 = vpop.permute.xlu0 %1864 }
0x17f0   :  { %v1867_v22 = vmul.f32 %v1865_v21, %v1861_v11 }
0x17f2   :  { %1869 = vrot.lane.b32.xlu1 %v1867_v22, %s2659_s18 }
0x17f6   :  { %1888 = vrot.lane.b32.xlu1 %v1994_v61, %s2660_s13 }
0x17fa   :  { %1907 = vrot.lane.b32.xlu1 %v1995_v24, %s2660_s13 }
0x17fe   :  { %1927 = vrot.lane.b32.xlu1 %v1997_v23, %s2660_s13 }
0x1864   :  { %v1870_v27 = vpop.permute.xlu1 %1869 }
0x1865   :  { %v1872_v28 = vadd.f32 %v1870_v27, %v1862_v26 }
0x1867   :  { %2652 = vtanh.f32 %v1872_v28 }
0x1868   :  { %v1889_v38 = vpop.permute.xlu1 %1888 }
0x186c   :  { %v1908_v37 = vpop.permute.xlu1 %1907 }
0x1870   :  { %v1928_v0 = vpop.permute.xlu1 %1927 }
0x1871   :  { %v2653_v33 = vpop.eup %2652 }
0x1872   :  { %1875 = vrot.lane.b32.xlu0 %v2653_v33, %s2658_s17 }
0x1876   :  { %1897 = vrot.lane.b32.xlu0 %v1896_v34, %s2660_s13 }
0x187a   :  { %1917 = vrot.lane.b32.xlu0 %v1996_v8, %s2660_s13 }
0x18e4   :  { %v1876_v35 = vpop.permute.xlu0 %1875 }
0x18e5   :  { %v1878_v36 = vmul.f32 %v1876_v35, %v1861_v11 }
0x18e7   :  { %v1891_v41 = vsub.f32 %v1878_v36, %v1889_v38 }
0x18e8   :  { %v1898_v56 = vpop.permute.xlu0 %1897 }
0x18e9   :  { %v1900_v39 = vmul.f32 %v1898_v56, %v1891_v41 }
0x18eb   :  { %v1910_v40 = vmul.f32 %v1908_v37, %v1900_v39 }
0x18ec   :  { %v1918_v46 = vpop.permute.xlu0 %1917 }
0x18ed   :  { %v1920_v42 = vadd.f32 %v1918_v46, %v1910_v40 }
0x18ef   :  { %v1930_v50 = vmul.f32 %v1928_v0, %v1920_v42 }
0x18f1   :  { %1932 = vrot.lane.b32.xlu0 %v1930_v50, %s2659_s18 }
0x1963   :  { %v1933_v31 = vpop.permute.xlu0 %1932 }
0x1964   :  { %v1935_v57 = vsel %vm226_vm6, %v1933_v31, 0.0 }
0x1965   :  { %1936 = vadd.xlane.f32.xlu1 %v1935_v57 }
0x19f2   :  { %v1937_v44 = vpop.xlane.xlu1 %1936 }
0x19f3   :  { %v1945_v45 = vadd.f32 %v1998_v43, %v1937_v44 }
0x19f5   :  { %1947 = vst.msk [vmem:[%s3200_s12] sm:$0xff] %vm1946_vm8, %v1945_v45 }

</bundles_post_ra>
